<compile_context>
chip_gen: v7x
topology: tpu7x:2x2x1
jax: 0.10.0
libtpu: 0.0.40
codegen_flags: <defaults>
</compile_context>

<pallas_src>
import jax
import jax.numpy as jnp
from jax.experimental import pallas as pl
from jax.experimental.pallas import tpu as pltpu

BN_EPS = 1e-5
K = 3          # Conv1d kernel size
L_IN = 9       # input length: 9 -> 7 -> 5 -> 3 (fc expects 3*256 features)


# ---------------------------------------------------------------------------
# Fused kernel: conv1+BN+ReLU -> conv2+BN+ReLU -> conv3+BN+ReLU -> fc
# ---------------------------------------------------------------------------
def net_kernel(p1_ref, w1_ref, b1_ref, g1_ref, be1_ref,
               w2_ref, b2_ref, g2_ref, be2_ref,
               w3_ref, b3_ref, g3_ref, be3_ref,
               wfc_ref, bfc_ref, o_ref):
    B = o_ref.shape[0]

    def bn_relu(y, gamma, beta):
        # BatchNorm1d, training-mode batch statistics over rows (= batch*length),
        # biased variance, folded into one scale/shift. All stats in f32.
        mu = jnp.mean(y, axis=0, keepdims=True)
        var = jnp.mean((y - mu) * (y - mu), axis=0, keepdims=True)
        scale = gamma * jax.lax.rsqrt(var + BN_EPS)      # (1, C); rsqrt -> EUP
        shift = beta - mu * scale
        return jnp.maximum(y * scale + shift, 0.0)

    def next_patches(a, l_in):
        # (B*l_in, C) -> (B*(l_in-K+1), K*C); feature index = k*C + c.
        # Static slices + lane concatenation: stays entirely in VMEM/vregs.
        l_out = l_in - K + 1
        rows = []
        for b in range(B):                               # B is static (tiny)
            base = b * l_in
            rows.append(jnp.concatenate(
                [a[base + k: base + k + l_out, :] for k in range(K)], axis=-1))
        return jnp.concatenate(rows, axis=0)

    # ---- layer 1: Conv1d(1, 256, 3). K*C_in = 3 would leave the MXU ~99% idle,
    #      so compute it as three VPU broadcast-FMAs on the (B*7, 256) tile.
    p1 = p1_ref[...]                                     # (B*7, 3) f32
    w1 = w1_ref[...]                                     # (3, 256) f32
    y1 = (p1[:, 0:1] * w1[0:1, :]
          + p1[:, 1:2] * w1[1:2, :]
          + p1[:, 2:3] * w1[2:3, :])                     # (B*7, 256) f32
    a1 = bn_relu(y1 + b1_ref[...], g1_ref[...], be1_ref[...])

    # ---- layer 2: Conv1d(256, 512, 3) as bf16 MXU matmul, f32 accumulation.
    p2 = next_patches(a1, 7).astype(jnp.bfloat16)        # (B*5, 768) bf16
    y2 = jnp.dot(p2, w2_ref[...], preferred_element_type=jnp.float32)
    a2 = bn_relu(y2 + b2_ref[...], g2_ref[...], be2_ref[...])   # (B*5, 512)

    # ---- layer 3: Conv1d(512, 256, 3) as bf16 MXU matmul, f32 accumulation.
    p3 = next_patches(a2, 5).astype(jnp.bfloat16)        # (B*3, 1536) bf16
    y3 = jnp.dot(p3, w3_ref[...], preferred_element_type=jnp.float32)
    a3 = bn_relu(y3 + b3_ref[...], g3_ref[...], be3_ref[...])   # (B*3, 256)

    # ---- fc: Linear(768, 1) as lane-wise multiply + reduce (wfc[t, c] matches
    #      torch's flatten order c*3 + t). Output stored lane-dense (B, 128);
    #      wrapper slices column 0.
    wfc = wfc_ref[...]                                   # (3, 256) f32
    bfc = bfc_ref[0, 0]                                  # scalar from SMEM
    for b in range(B):
        contrib = a3[b * 3:(b + 1) * 3, :] * wfc         # (3, 256)
        val = jnp.sum(jnp.sum(contrib, axis=1, keepdims=True),
                      axis=0, keepdims=True) + bfc       # (1, 1)
        o_ref[b:b + 1, :] = jnp.broadcast_to(val, (1, o_ref.shape[1]))


# ---------------------------------------------------------------------------
# Wrapper
# ---------------------------------------------------------------------------
def _vmem():
    return pl.BlockSpec(memory_space=pltpu.MemorySpace.VMEM)


@jax.jit
def net_forward(x_ncl, kp):
    """x_ncl: (B, 1, 9) float32 (PyTorch NCL). Returns (B, 1) float32."""
    B = x_ncl.shape[0]
    x = x_ncl[:, 0, :]                                   # (B, 9), C_in == 1
    # Layer-1 im2col on the raw input only (tiny; fused by XLA into input prep):
    # p1[b*7 + t, k] = x[b, t + k]
    p1 = jnp.stack([x[:, k:k + 7] for k in range(K)], axis=-1).reshape(B * 7, K)

    out = pl.pallas_call(
        net_kernel,
        out_shape=jax.ShapeDtypeStruct((B, 128), jnp.float32),   # lane-dense slab
        in_specs=[_vmem()] * 14
                 + [pl.BlockSpec(memory_space=pltpu.MemorySpace.SMEM)],  # fc bias scalar
        out_specs=_vmem(),
        compiler_params=pltpu.CompilerParams(vmem_limit_bytes=16 * 1024 * 1024),
    )(p1,
      kp["w1"], kp["b1"], kp["g1"], kp["be1"],
      kp["w2"], kp["b2"], kp["g2"], kp["be2"],
      kp["w3"], kp["b3"], kp["g3"], kp["be3"],
      kp["wfc"], kp["bfc"])
    return out[:, :1]                                    # (B, 1)


# ---------------------------------------------------------------------------
# Pure-JAX reference (same dtype path: bf16 matmul inputs, f32 accumulation)
# ---------------------------------------------------------------------------
def _bn_relu_ref(y, g, be):
    mu = jnp.mean(y, axis=0, keepdims=True)
    var = jnp.mean((y - mu) ** 2, axis=0, keepdims=True)
    return jnp.maximum((y - mu) * jax.lax.rsqrt(var + BN_EPS) * g + be, 0.0)


def _patches_ref(a, B, l_in):
    l_out = l_in - K + 1
    a3 = a.reshape(B, l_in, -1)
    cols = jnp.concatenate([a3[:, k:k + l_out, :] for k in range(K)], axis=-1)
    return cols.reshape(B * l_out, -1)


def net_forward_ref(x_ncl, kp):
    B = x_ncl.shape[0]
    x = x_ncl[:, 0, :]
    p1 = jnp.stack([x[:, k:k + 7] for k in range(K)], axis=-1).reshape(B * 7, K)
    a1 = _bn_relu_ref(p1 @ kp["w1"] + kp["b1"], kp["g1"], kp["be1"])
    p2 = _patches_ref(a1, B, 7).astype(jnp.bfloat16)
    a2 = _bn_relu_ref(
        jnp.dot(p2, kp["w2"], preferred_element_type=jnp.float32) + kp["b2"],
        kp["g2"], kp["be2"])
    p3 = _patches_ref(a2, B, 5).astype(jnp.bfloat16)
    a3 = _bn_relu_ref(
        jnp.dot(p3, kp["w3"], preferred_element_type=jnp.float32) + kp["b3"],
        kp["g3"], kp["be3"])
    flat = a3.reshape(B, 3, 256) * kp["wfc"][None]       # (B, 3, 256)
    return jnp.sum(flat, axis=(1, 2))[:, None] + kp["bfc"][0, 0]


# ---------------------------------------------------------------------------
# Deterministic synthetic parameters (PyTorch layouts) + kernel-layout packing
# ---------------------------------------------------------------------------
def init_torch_params(key):
    """Conv1d weights: (C_out, C_in, K); bias (C_out,); BN gamma/beta (C_out,);
    fc weight (1, 768); fc bias (1,)."""
    def conv(key, c_in, c_out):
        k1, k2, k3, k4 = jax.random.split(key, 4)
        bound = 1.0 / jnp.sqrt(jnp.float32(c_in * K))
        w = jax.random.uniform(k1, (c_out, c_in, K), jnp.float32, -bound, bound)
        b = jax.random.uniform(k2, (c_out,), jnp.float32, -bound, bound)
        gamma = 1.0 + 0.1 * jax.random.normal(k3, (c_out,), jnp.float32)
        beta = 0.1 * jax.random.normal(k4, (c_out,), jnp.float32)
        return w, b, gamma, beta

    k1, k2, k3, k4 = jax.random.split(key, 4)
    p = {"l1": conv(k1, 1, 256), "l2": conv(k2, 256, 512), "l3": conv(k3, 512, 256)}
    kf1, kf2 = jax.random.split(k4)
    bound = 1.0 / jnp.sqrt(jnp.float32(3 * 256))
    p["fc"] = (jax.random.uniform(kf1, (1, 3 * 256), jnp.float32, -bound, bound),
               jax.random.uniform(kf2, (1,), jnp.float32, -bound, bound))
    return p


def prepare_kernel_params(tp):
    """PyTorch layouts -> kernel layouts; l2/l3 matmul weights cast to bf16."""
    out = {}
    for name, idx in (("1", "l1"), ("2", "l2"), ("3", "l3")):
        w, b, g, be = tp[idx]
        c_out = w.shape[0]
        # (C_out, C_in, K) -> (K, C_in, C_out) -> (K*C_in, C_out); row = k*C_in + c
        wk = jnp.transpose(w, (2, 1, 0)).reshape(-1, c_out)
        if name in ("2", "3"):
            wk = wk.astype(jnp.bfloat16)
        out["w" + name] = wk
        out["b" + name] = b.reshape(1, c_out)
        out["g" + name] = g.reshape(1, c_out)
        out["be" + name] = be.reshape(1, c_out)
    wfc, bfc = tp["fc"]
    # torch flatten of (B, 256, 3) uses feature index c*3 + t  ->  wfc_k[t, c]
    out["wfc"] = jnp.transpose(wfc[0].reshape(256, 3), (1, 0))  # (3, 256)
    out["bfc"] = bfc.reshape(1, 1)                              # scalar in SMEM
    return out


# TODO(synk): eval-mode BatchNorm (running_mean/running_var + momentum updates)
# is not modeled; this forward uses training-mode batch statistics, matching the
# PyTorch module in train() mode.
if __name__ == "__main__":
    key = jax.random.PRNGKey(0)
    kparam, kx = jax.random.split(key)
    torch_params = init_torch_params(kparam)
    kp = prepare_kernel_params(torch_params)

    # Conv1d x3 (kernel 3, stride 1, no pad) must leave length 3 for the
    # Linear(3*256, 1) layer -> L_in = 9. PyTorch NCL input layout.
    B = 2
    x = jax.random.normal(kx, (B, 1, L_IN), jnp.float32)

    out = jax.block_until_ready(net_forward(x, kp))
    ref = jax.block_until_ready(net_forward_ref(x, kp))

    assert out.shape == (B, 1), out.shape
    assert jnp.allclose(out, ref, rtol=5e-3, atol=5e-3), (out, ref)
    print("KERNEL_OK")
</pallas_src>

<mosaic_0001>
module attributes {stable_mosaic.version = 11 : i64} {
  func.func @net_kernel(%arg0: memref<14x3xf32, #tpu.memory_space<vmem>>, %arg1: memref<3x256xf32, #tpu.memory_space<vmem>>, %arg2: memref<1x256xf32, #tpu.memory_space<vmem>>, %arg3: memref<1x256xf32, #tpu.memory_space<vmem>>, %arg4: memref<1x256xf32, #tpu.memory_space<vmem>>, %arg5: memref<768x512xbf16, #tpu.memory_space<vmem>>, %arg6: memref<1x512xf32, #tpu.memory_space<vmem>>, %arg7: memref<1x512xf32, #tpu.memory_space<vmem>>, %arg8: memref<1x512xf32, #tpu.memory_space<vmem>>, %arg9: memref<1536x256xbf16, #tpu.memory_space<vmem>>, %arg10: memref<1x256xf32, #tpu.memory_space<vmem>>, %arg11: memref<1x256xf32, #tpu.memory_space<vmem>>, %arg12: memref<1x256xf32, #tpu.memory_space<vmem>>, %arg13: memref<3x256xf32, #tpu.memory_space<vmem>>, %arg14: memref<1x1xf32, #tpu.memory_space<smem>>, %arg15: memref<2x128xf32, #tpu.memory_space<vmem>>) attributes {dimension_semantics = [], scalar_prefetch = 0 : i64, scratch_operands = 0 : i64, tpu.core_type = #tpu.core_type<tc>} {
    %c0 = arith.constant 0 : index
    %c0_0 = arith.constant 0 : index
    %0 = vector.load %arg0[%c0, %c0_0] : memref<14x3xf32, #tpu.memory_space<vmem>>, vector<14x3xf32>
    %c0_1 = arith.constant 0 : index
    %c0_2 = arith.constant 0 : index
    %1 = vector.load %arg1[%c0_1, %c0_2] : memref<3x256xf32, #tpu.memory_space<vmem>>, vector<3x256xf32>
    %2 = vector.extract_strided_slice %0 {offsets = [0, 0], sizes = [14, 1], strides = [1, 1]} : vector<14x3xf32> to vector<14x1xf32>
    %3 = vector.extract_strided_slice %1 {offsets = [0, 0], sizes = [1, 256], strides = [1, 1]} : vector<3x256xf32> to vector<1x256xf32>
    %4 = vector.broadcast %2 : vector<14x1xf32> to vector<14x256xf32>
    %5 = vector.broadcast %3 : vector<1x256xf32> to vector<14x256xf32>
    %6 = arith.mulf %4, %5 : vector<14x256xf32>
    %7 = vector.extract_strided_slice %0 {offsets = [0, 1], sizes = [14, 1], strides = [1, 1]} : vector<14x3xf32> to vector<14x1xf32>
    %8 = vector.extract_strided_slice %1 {offsets = [1, 0], sizes = [1, 256], strides = [1, 1]} : vector<3x256xf32> to vector<1x256xf32>
    %9 = vector.broadcast %7 : vector<14x1xf32> to vector<14x256xf32>
    %10 = vector.broadcast %8 : vector<1x256xf32> to vector<14x256xf32>
    %11 = arith.mulf %9, %10 : vector<14x256xf32>
    %12 = arith.addf %6, %11 : vector<14x256xf32>
    %13 = vector.extract_strided_slice %0 {offsets = [0, 2], sizes = [14, 1], strides = [1, 1]} : vector<14x3xf32> to vector<14x1xf32>
    %14 = vector.extract_strided_slice %1 {offsets = [2, 0], sizes = [1, 256], strides = [1, 1]} : vector<3x256xf32> to vector<1x256xf32>
    %15 = vector.broadcast %13 : vector<14x1xf32> to vector<14x256xf32>
    %16 = vector.broadcast %14 : vector<1x256xf32> to vector<14x256xf32>
    %17 = arith.mulf %15, %16 : vector<14x256xf32>
    %18 = arith.addf %12, %17 : vector<14x256xf32>
    %c0_3 = arith.constant 0 : index
    %c0_4 = arith.constant 0 : index
    %19 = vector.load %arg2[%c0_3, %c0_4] : memref<1x256xf32, #tpu.memory_space<vmem>>, vector<1x256xf32>
    %20 = vector.broadcast %19 : vector<1x256xf32> to vector<14x256xf32>
    %21 = arith.addf %18, %20 : vector<14x256xf32>
    %c0_5 = arith.constant 0 : index
    %c0_6 = arith.constant 0 : index
    %22 = vector.load %arg3[%c0_5, %c0_6] : memref<1x256xf32, #tpu.memory_space<vmem>>, vector<1x256xf32>
    %c0_7 = arith.constant 0 : index
    %c0_8 = arith.constant 0 : index
    %23 = vector.load %arg4[%c0_7, %c0_8] : memref<1x256xf32, #tpu.memory_space<vmem>>, vector<1x256xf32>
    %cst = arith.constant dense<0.000000e+00> : vector<256xf32>
    %24 = vector.multi_reduction <add>, %21, %cst [0] : vector<14x256xf32> to vector<256xf32>
    %25 = vector.shape_cast %24 : vector<256xf32> to vector<1x256xf32>
    %cst_9 = arith.constant 1.400000e+01 : f32
    %26 = vector.broadcast %cst_9 : f32 to vector<1x256xf32>
    %27 = arith.divf %25, %26 : vector<1x256xf32>
    %28 = vector.broadcast %27 : vector<1x256xf32> to vector<14x256xf32>
    %29 = arith.subf %21, %28 : vector<14x256xf32>
    %30 = vector.broadcast %27 : vector<1x256xf32> to vector<14x256xf32>
    %31 = arith.subf %21, %30 : vector<14x256xf32>
    %32 = arith.mulf %29, %31 : vector<14x256xf32>
    %cst_10 = arith.constant dense<0.000000e+00> : vector<256xf32>
    %33 = vector.multi_reduction <add>, %32, %cst_10 [0] : vector<14x256xf32> to vector<256xf32>
    %34 = vector.shape_cast %33 : vector<256xf32> to vector<1x256xf32>
    %cst_11 = arith.constant 1.400000e+01 : f32
    %35 = vector.broadcast %cst_11 : f32 to vector<1x256xf32>
    %36 = arith.divf %34, %35 : vector<1x256xf32>
    %cst_12 = arith.constant 9.99999974E-6 : f32
    %37 = vector.broadcast %cst_12 : f32 to vector<1x256xf32>
    %38 = arith.addf %36, %37 : vector<1x256xf32>
    %39 = math.rsqrt %38 : vector<1x256xf32>
    %40 = arith.mulf %22, %39 : vector<1x256xf32>
    %41 = arith.mulf %27, %40 : vector<1x256xf32>
    %42 = arith.subf %23, %41 : vector<1x256xf32>
    %43 = vector.broadcast %40 : vector<1x256xf32> to vector<14x256xf32>
    %44 = arith.mulf %21, %43 : vector<14x256xf32>
    %45 = vector.broadcast %42 : vector<1x256xf32> to vector<14x256xf32>
    %46 = arith.addf %44, %45 : vector<14x256xf32>
    %cst_13 = arith.constant 0.000000e+00 : f32
    %47 = vector.broadcast %cst_13 : f32 to vector<14x256xf32>
    %48 = arith.maximumf %46, %47 : vector<14x256xf32>
    %49 = vector.extract_strided_slice %48 {offsets = [0, 0], sizes = [5, 256], strides = [1, 1]} : vector<14x256xf32> to vector<5x256xf32>
    %50 = vector.extract_strided_slice %48 {offsets = [1, 0], sizes = [5, 256], strides = [1, 1]} : vector<14x256xf32> to vector<5x256xf32>
    %51 = vector.extract_strided_slice %48 {offsets = [2, 0], sizes = [5, 256], strides = [1, 1]} : vector<14x256xf32> to vector<5x256xf32>
    %52 = tpu.concatenate %49, %50, %51 in 1 : vector<5x256xf32>, vector<5x256xf32>, vector<5x256xf32> -> vector<5x768xf32>
    %53 = vector.extract_strided_slice %48 {offsets = [7, 0], sizes = [5, 256], strides = [1, 1]} : vector<14x256xf32> to vector<5x256xf32>
    %54 = vector.extract_strided_slice %48 {offsets = [8, 0], sizes = [5, 256], strides = [1, 1]} : vector<14x256xf32> to vector<5x256xf32>
    %55 = vector.extract_strided_slice %48 {offsets = [9, 0], sizes = [5, 256], strides = [1, 1]} : vector<14x256xf32> to vector<5x256xf32>
    %56 = tpu.concatenate %53, %54, %55 in 1 : vector<5x256xf32>, vector<5x256xf32>, vector<5x256xf32> -> vector<5x768xf32>
    %57 = tpu.concatenate %52, %56 in 0 : vector<5x768xf32>, vector<5x768xf32> -> vector<10x768xf32>
    %58 = arith.truncf %57 : vector<10x768xf32> to vector<10x768xbf16>
    %c0_14 = arith.constant 0 : index
    %c0_15 = arith.constant 0 : index
    %59 = vector.load %arg5[%c0_14, %c0_15] : memref<768x512xbf16, #tpu.memory_space<vmem>>, vector<768x512xbf16>
    %cst_16 = arith.constant dense<0.000000e+00> : vector<10x512xf32>
    %60 = tpu.matmul %58, %59, %cst_16 {dimension_numbers = #tpu.dot_dimension_numbers<[1], [0], [0], [1], [0, 0, 1, 1], [], []>} : vector<10x768xbf16>, vector<768x512xbf16>, vector<10x512xf32> -> vector<10x512xf32>
    %c0_17 = arith.constant 0 : index
    %c0_18 = arith.constant 0 : index
    %61 = vector.load %arg6[%c0_17, %c0_18] : memref<1x512xf32, #tpu.memory_space<vmem>>, vector<1x512xf32>
    %62 = vector.broadcast %61 : vector<1x512xf32> to vector<10x512xf32>
    %63 = arith.addf %60, %62 : vector<10x512xf32>
    %c0_19 = arith.constant 0 : index
    %c0_20 = arith.constant 0 : index
    %64 = vector.load %arg7[%c0_19, %c0_20] : memref<1x512xf32, #tpu.memory_space<vmem>>, vector<1x512xf32>
    %c0_21 = arith.constant 0 : index
    %c0_22 = arith.constant 0 : index
    %65 = vector.load %arg8[%c0_21, %c0_22] : memref<1x512xf32, #tpu.memory_space<vmem>>, vector<1x512xf32>
    %cst_23 = arith.constant dense<0.000000e+00> : vector<512xf32>
    %66 = vector.multi_reduction <add>, %63, %cst_23 [0] : vector<10x512xf32> to vector<512xf32>
    %67 = vector.shape_cast %66 : vector<512xf32> to vector<1x512xf32>
    %cst_24 = arith.constant 1.000000e+01 : f32
    %68 = vector.broadcast %cst_24 : f32 to vector<1x512xf32>
    %69 = arith.divf %67, %68 : vector<1x512xf32>
    %70 = vector.broadcast %69 : vector<1x512xf32> to vector<10x512xf32>
    %71 = arith.subf %63, %70 : vector<10x512xf32>
    %72 = vector.broadcast %69 : vector<1x512xf32> to vector<10x512xf32>
    %73 = arith.subf %63, %72 : vector<10x512xf32>
    %74 = arith.mulf %71, %73 : vector<10x512xf32>
    %cst_25 = arith.constant dense<0.000000e+00> : vector<512xf32>
    %75 = vector.multi_reduction <add>, %74, %cst_25 [0] : vector<10x512xf32> to vector<512xf32>
    %76 = vector.shape_cast %75 : vector<512xf32> to vector<1x512xf32>
    %cst_26 = arith.constant 1.000000e+01 : f32
    %77 = vector.broadcast %cst_26 : f32 to vector<1x512xf32>
    %78 = arith.divf %76, %77 : vector<1x512xf32>
    %cst_27 = arith.constant 9.99999974E-6 : f32
    %79 = vector.broadcast %cst_27 : f32 to vector<1x512xf32>
    %80 = arith.addf %78, %79 : vector<1x512xf32>
    %81 = math.rsqrt %80 : vector<1x512xf32>
    %82 = arith.mulf %64, %81 : vector<1x512xf32>
    %83 = arith.mulf %69, %82 : vector<1x512xf32>
    %84 = arith.subf %65, %83 : vector<1x512xf32>
    %85 = vector.broadcast %82 : vector<1x512xf32> to vector<10x512xf32>
    %86 = arith.mulf %63, %85 : vector<10x512xf32>
    %87 = vector.broadcast %84 : vector<1x512xf32> to vector<10x512xf32>
    %88 = arith.addf %86, %87 : vector<10x512xf32>
    %cst_28 = arith.constant 0.000000e+00 : f32
    %89 = vector.broadcast %cst_28 : f32 to vector<10x512xf32>
    %90 = arith.maximumf %88, %89 : vector<10x512xf32>
    %91 = vector.extract_strided_slice %90 {offsets = [0, 0], sizes = [3, 512], strides = [1, 1]} : vector<10x512xf32> to vector<3x512xf32>
    %92 = vector.extract_strided_slice %90 {offsets = [1, 0], sizes = [3, 512], strides = [1, 1]} : vector<10x512xf32> to vector<3x512xf32>
    %93 = vector.extract_strided_slice %90 {offsets = [2, 0], sizes = [3, 512], strides = [1, 1]} : vector<10x512xf32> to vector<3x512xf32>
    %94 = tpu.concatenate %91, %92, %93 in 1 : vector<3x512xf32>, vector<3x512xf32>, vector<3x512xf32> -> vector<3x1536xf32>
    %95 = vector.extract_strided_slice %90 {offsets = [5, 0], sizes = [3, 512], strides = [1, 1]} : vector<10x512xf32> to vector<3x512xf32>
    %96 = vector.extract_strided_slice %90 {offsets = [6, 0], sizes = [3, 512], strides = [1, 1]} : vector<10x512xf32> to vector<3x512xf32>
    %97 = vector.extract_strided_slice %90 {offsets = [7, 0], sizes = [3, 512], strides = [1, 1]} : vector<10x512xf32> to vector<3x512xf32>
    %98 = tpu.concatenate %95, %96, %97 in 1 : vector<3x512xf32>, vector<3x512xf32>, vector<3x512xf32> -> vector<3x1536xf32>
    %99 = tpu.concatenate %94, %98 in 0 : vector<3x1536xf32>, vector<3x1536xf32> -> vector<6x1536xf32>
    %100 = arith.truncf %99 : vector<6x1536xf32> to vector<6x1536xbf16>
    %c0_29 = arith.constant 0 : index
    %c0_30 = arith.constant 0 : index
    %101 = vector.load %arg9[%c0_29, %c0_30] : memref<1536x256xbf16, #tpu.memory_space<vmem>>, vector<1536x256xbf16>
    %cst_31 = arith.constant dense<0.000000e+00> : vector<6x256xf32>
    %102 = tpu.matmul %100, %101, %cst_31 {dimension_numbers = #tpu.dot_dimension_numbers<[1], [0], [0], [1], [0, 0, 1, 1], [], []>} : vector<6x1536xbf16>, vector<1536x256xbf16>, vector<6x256xf32> -> vector<6x256xf32>
    %c0_32 = arith.constant 0 : index
    %c0_33 = arith.constant 0 : index
    %103 = vector.load %arg10[%c0_32, %c0_33] : memref<1x256xf32, #tpu.memory_space<vmem>>, vector<1x256xf32>
    %104 = vector.broadcast %103 : vector<1x256xf32> to vector<6x256xf32>
    %105 = arith.addf %102, %104 : vector<6x256xf32>
    %c0_34 = arith.constant 0 : index
    %c0_35 = arith.constant 0 : index
    %106 = vector.load %arg11[%c0_34, %c0_35] : memref<1x256xf32, #tpu.memory_space<vmem>>, vector<1x256xf32>
    %c0_36 = arith.constant 0 : index
    %c0_37 = arith.constant 0 : index
    %107 = vector.load %arg12[%c0_36, %c0_37] : memref<1x256xf32, #tpu.memory_space<vmem>>, vector<1x256xf32>
    %cst_38 = arith.constant dense<0.000000e+00> : vector<256xf32>
    %108 = vector.multi_reduction <add>, %105, %cst_38 [0] : vector<6x256xf32> to vector<256xf32>
    %109 = vector.shape_cast %108 : vector<256xf32> to vector<1x256xf32>
    %cst_39 = arith.constant 6.000000e+00 : f32
    %110 = vector.broadcast %cst_39 : f32 to vector<1x256xf32>
    %111 = arith.divf %109, %110 : vector<1x256xf32>
    %112 = vector.broadcast %111 : vector<1x256xf32> to vector<6x256xf32>
    %113 = arith.subf %105, %112 : vector<6x256xf32>
    %114 = vector.broadcast %111 : vector<1x256xf32> to vector<6x256xf32>
    %115 = arith.subf %105, %114 : vector<6x256xf32>
    %116 = arith.mulf %113, %115 : vector<6x256xf32>
    %cst_40 = arith.constant dense<0.000000e+00> : vector<256xf32>
    %117 = vector.multi_reduction <add>, %116, %cst_40 [0] : vector<6x256xf32> to vector<256xf32>
    %118 = vector.shape_cast %117 : vector<256xf32> to vector<1x256xf32>
    %cst_41 = arith.constant 6.000000e+00 : f32
    %119 = vector.broadcast %cst_41 : f32 to vector<1x256xf32>
    %120 = arith.divf %118, %119 : vector<1x256xf32>
    %cst_42 = arith.constant 9.99999974E-6 : f32
    %121 = vector.broadcast %cst_42 : f32 to vector<1x256xf32>
    %122 = arith.addf %120, %121 : vector<1x256xf32>
    %123 = math.rsqrt %122 : vector<1x256xf32>
    %124 = arith.mulf %106, %123 : vector<1x256xf32>
    %125 = arith.mulf %111, %124 : vector<1x256xf32>
    %126 = arith.subf %107, %125 : vector<1x256xf32>
    %127 = vector.broadcast %124 : vector<1x256xf32> to vector<6x256xf32>
    %128 = arith.mulf %105, %127 : vector<6x256xf32>
    %129 = vector.broadcast %126 : vector<1x256xf32> to vector<6x256xf32>
    %130 = arith.addf %128, %129 : vector<6x256xf32>
    %cst_43 = arith.constant 0.000000e+00 : f32
    %131 = vector.broadcast %cst_43 : f32 to vector<6x256xf32>
    %132 = arith.maximumf %130, %131 : vector<6x256xf32>
    %c0_44 = arith.constant 0 : index
    %c0_45 = arith.constant 0 : index
    %133 = vector.load %arg13[%c0_44, %c0_45] : memref<3x256xf32, #tpu.memory_space<vmem>>, vector<3x256xf32>
    %c0_46 = arith.constant 0 : index
    %c0_47 = arith.constant 0 : index
    %134 = memref.load %arg14[%c0_46, %c0_47] : memref<1x1xf32, #tpu.memory_space<smem>>
    %135 = vector.extract_strided_slice %132 {offsets = [0, 0], sizes = [3, 256], strides = [1, 1]} : vector<6x256xf32> to vector<3x256xf32>
    %136 = arith.mulf %135, %133 : vector<3x256xf32>
    %cst_48 = arith.constant dense<0.000000e+00> : vector<3xf32>
    %137 = vector.multi_reduction <add>, %136, %cst_48 [1] : vector<3x256xf32> to vector<3xf32>
    %138 = vector.shape_cast %137 : vector<3xf32> to vector<3x1xf32>
    %cst_49 = arith.constant dense<0.000000e+00> : vector<1xf32>
    %139 = vector.multi_reduction <add>, %138, %cst_49 [0] : vector<3x1xf32> to vector<1xf32>
    %140 = vector.shape_cast %139 : vector<1xf32> to vector<1x1xf32>
    %141 = vector.broadcast %134 : f32 to vector<1x1xf32>
    %142 = arith.addf %140, %141 : vector<1x1xf32>
    %143 = vector.shape_cast %142 : vector<1x1xf32> to vector<1x1xf32>
    %144 = vector.broadcast %143 : vector<1x1xf32> to vector<1x128xf32>
    %c0_50 = arith.constant 0 : index
    %c0_51 = arith.constant 0 : index
    %145 = vector.load %arg15[%c0_50, %c0_51] : memref<2x128xf32, #tpu.memory_space<vmem>>, vector<1x128xf32>
    tpu.vector_store %arg15[%c0_50, %c0_51], %144 {strides = array<i32>} : memref<2x128xf32, #tpu.memory_space<vmem>>, vector<1x128xf32>,
    %146 = vector.extract_strided_slice %132 {offsets = [3, 0], sizes = [3, 256], strides = [1, 1]} : vector<6x256xf32> to vector<3x256xf32>
    %147 = arith.mulf %146, %133 : vector<3x256xf32>
    %cst_52 = arith.constant dense<0.000000e+00> : vector<3xf32>
    %148 = vector.multi_reduction <add>, %147, %cst_52 [1] : vector<3x256xf32> to vector<3xf32>
    %149 = vector.shape_cast %148 : vector<3xf32> to vector<3x1xf32>
    %cst_53 = arith.constant dense<0.000000e+00> : vector<1xf32>
    %150 = vector.multi_reduction <add>, %149, %cst_53 [0] : vector<3x1xf32> to vector<1xf32>
    %151 = vector.shape_cast %150 : vector<1xf32> to vector<1x1xf32>
    %152 = vector.broadcast %134 : f32 to vector<1x1xf32>
    %153 = arith.addf %151, %152 : vector<1x1xf32>
    %154 = vector.shape_cast %153 : vector<1x1xf32> to vector<1x1xf32>
    %155 = vector.broadcast %154 : vector<1x1xf32> to vector<1x128xf32>
    %c1 = arith.constant 1 : index
    %c0_54 = arith.constant 0 : index
    %156 = vector.load %arg15[%c1, %c0_54] : memref<2x128xf32, #tpu.memory_space<vmem>>, vector<1x128xf32>
    tpu.vector_store %arg15[%c1, %c0_54], %155 {strides = array<i32>} : memref<2x128xf32, #tpu.memory_space<vmem>>, vector<1x128xf32>,
    return
  }
}

</mosaic_0001>

<bundles_post_ra>
// kernel: net_forward.1
= control target key start
LH: loop header
LB: loop body
LE: loop exit
PB: predicated region body
PF: predicated region fallthrough
CT: control target
= control target key end

     0   :  { %21 = vsyncpa [#allocation4], 0  ;;  %s5202_s0 = inlined_call_operand.vmem [shape: f32[14,3], index: 0, kind: input, shape index: {}]   ;;  %s5203_s1 = inlined_call_operand.vmem [shape: f32[3,256], index: 1, kind: input, shape index: {}]   ;;  %s5204_s2 = inlined_call_operand.vmem [shape: f32[1,256], index: 2, kind: input, shape index: {}]   ;;  %s5205_s3 = inlined_call_operand.vmem [shape: f32[1,256], index: 3, kind: input, shape index: {}]   ;;  %s5206_s4 = inlined_call_operand.vmem [shape: f32[1,256], index: 4, kind: input, shape index: {}]   ;;  %s5207_s5 = inlined_call_operand.hbm [shape: bf16[768,512], index: 5, kind: input, shape index: {}]   ;;  %s5208_s6 = inlined_call_operand.vmem [shape: f32[1,512], index: 6, kind: input, shape index: {}]   ;;  %s5209_s7 = inlined_call_operand.vmem [shape: f32[1,512], index: 7, kind: input, shape index: {}]   ;;  %s5210_s8 = inlined_call_operand.vmem [shape: f32[1,512], index: 8, kind: input, shape index: {}]   ;;  %s5211_s9 = inlined_call_operand.hbm [shape: bf16[1536,256], index: 9, kind: input, shape index: {}]   ;;  %s5212_s10 = inlined_call_operand.vmem [shape: f32[1,256], index: 10, kind: input, shape index: {}]   ;;  %s5213_s11 = inlined_call_operand.vmem [shape: f32[1,256], index: 11, kind: input, shape index: {}]   ;;  %s5214_s12 = inlined_call_operand.vmem [shape: f32[1,256], index: 12, kind: input, shape index: {}]   ;;  %s5215_s13 = inlined_call_operand.vmem [shape: f32[3,256], index: 13, kind: input, shape index: {}]   ;;  %s5216_s14 = inlined_call_operand.<no memory space> [shape: f32[1,1], index: 14, kind: input, shape index: {}]   ;;  %s5217_s15 = inlined_call_operand.vmem [shape: f32[2,128], index: 15, kind: output, shape index: {}]  }
   0x1   :  { %22 = vsyncpa [#allocation6], 0  ;;  %s4780_s18 = smov [#allocation3]   ;;  %s4732_s22 = scalar_lea.hbm %s5207_s5, 24576 }
   0x2   :  { %s38_s19 = sshll.u32 %s4780_s18, 4  ;;  %p4733_p0 = scmp.ne.s32.totalorder %s5207_s5, %s4732_s22  ;;  %s39_s19 = int_to_ptr.vmem [resolvable:$true] %s38_s19 }
   0x3   :  { %p4736_p1 = scmp.lt.u32.totalorder %s4732_s22, %s5207_s5 }
   0x5   :  { %p4738_p2 = pnand %p4736_p1, %p4733_p0 }
   0x7   :  { %4741 = shalt.err (!%p4738_p2)
}
   0x8   :  { %s4742_s27 = scalar_lea.vmem %s39_s19, 24576  ;;  %p4747_p4 = scmp.lt.s32.totalorder %s39_s19, %s39_s19 }
   0x9   :  { %p4743_p3 = scmp.ne.s32.totalorder %s39_s19, %s4742_s27  ;;  %p4748_p5 = scmp.lt.s32.totalorder %s4742_s27, %s4742_s27 }
   0xb   :  { %p4749_p6 = por %p4748_p5, %p4747_p4 }
   0xd   :  { %p4750_p7 = pnand %p4749_p6, %p4743_p3 }
   0xf   :  { %4753 = shalt.err (!%p4750_p7)
}
  0x10   :  { %s4781_s28 = smov 256   ;;  %s4782_s29 = smov 16  }
  0x11   :  { %44 = dma.hbm_to_vmem [thread:$0]  %s5207_s5, 24576, %s39_s19, [#allocation4], %s4781_s28, %s4781_s28, %s4782_s29  }
  0x12   :  { %s4783_s17 = smov [#allocation5]   ;;  %s4754_s22 = scalar_lea.hbm %s5211_s9, 24576 }
  0x13   :  { %s56_s18 = sshll.u32 %s4783_s17, 4  ;;  %p4755_p8 = scmp.ne.s32.totalorder %s5211_s9, %s4754_s22  ;;  %s57_s18 = int_to_ptr.vmem [resolvable:$true] %s56_s18 }
  0x14   :  { %p4758_p9 = scmp.lt.u32.totalorder %s4754_s22, %s5211_s9 }
  0x16   :  { %p4760_p10 = pnand %p4758_p9, %p4755_p8 }
  0x18   :  { %4763 = shalt.err (!%p4760_p10)
}
  0x19   :  { %s4764_s27 = scalar_lea.vmem %s57_s18, 24576  ;;  %p4769_p12 = scmp.lt.s32.totalorder %s57_s18, %s57_s18 }
  0x1a   :  { %p4765_p11 = scmp.ne.s32.totalorder %s57_s18, %s4764_s27  ;;  %p4770_p13 = scmp.lt.s32.totalorder %s4764_s27, %s4764_s27 }
  0x1c   :  { %p4771_p0 = por %p4770_p13, %p4769_p12 }
  0x1e   :  { %p4772_p1 = pnand %p4771_p0, %p4765_p11 }
  0x20   :  { %4775 = shalt.err (!%p4772_p1)
}
  0x21   :  { %s4784_s5 = smov 128   ;;  %s4785_s19 = smov 8  }
  0x22   :  { %62 = dma.hbm_to_vmem [thread:$0]  %s5211_s9, 24576, %s57_s18, [#allocation6], %s4784_s5, %s4784_s5, %s4785_s19  }
  0x23   :  { %4776 = dma.done.wait [#allocation4], 24576  }
  0x24   :  { %4777 = vsyncadd [#allocation4], 4294942720 }
  0x25   :  { %4778 = dma.done.wait [#allocation6], 24576  }
  0x26   :  { %4779 = vsyncadd [#allocation6], 4294942720  ;;  %v4786_v0 = vmov 0   ;;  %v80_v1 = vld [vmem:[%s5202_s0 + $0x8] sm:$0x3f]  ;;  %v79_v2 = vld [vmem:[%s5202_s0] sm:$0xff]  ;;  %v93_v38 = vlaneseq }
  0x27   :  { %4135 = vset.pattern.permute.xlu1 %v4786_v0  ;;  %4133 = vset.pattern.permute.xlu0 %v4786_v0  ;;  %v4787_v3 = vmov 1   ;;  %v4788_v4 = vmov 2   ;;  %v4139_v5 = vld [vmem:[#allocation3 + $0x4] ss:$16 sps:$4 sm:$0xff]   ;;  %v4141_v6 = vld [vmem:[#allocation3] ss:$16 sps:$4 sm:$0xff]  }
  0x28   :  { %89 = vperm.xlu0 %4133, %v80_v1   ;;  %84 = vperm.xlu1 %4135, %v79_v2   ;;  %v4142_v7 = vld [vmem:[#allocation3 + $0x24] ss:$16 sps:$4 sm:$0xff]   ;;  %v4144_v8 = vld [vmem:[#allocation3 + $0x20] ss:$16 sps:$4 sm:$0xff]   ;;  %v4900_v39 = vshrl.u32 %v93_v38, 7  ;;  %vm201_vm0 = vcmask 1045504  }
  0x29   :  { %1550 = vmatprep.subr.bf16.mxu1 %v4139_v5  ;;  %v4145_v9 = vld [vmem:[#allocation3 + $0x44] ss:$16 sps:$4 sm:$0xff]   ;;  %v4147_v10 = vld [vmem:[#allocation3 + $0x40] ss:$16 sps:$4 sm:$0xff]   ;;  %vm363_vm1 = vcmask 1044480   ;;  %vm1810_vm2 = vcmask 1041408  }
  0x2a   :  { %1551 = vmatpush1.bf16.msra.mxu1 %v4141_v6  ;;  %v4148_v11 = vld [vmem:[#allocation3 + $0x64] ss:$16 sps:$4 sm:$0xff]   ;;  %v4150_v12 = vld [vmem:[#allocation3 + $0x60] ss:$16 sps:$4 sm:$0xff]   ;;  %v4903_v40 = vsub.s32 1, %v4900_v39  ;;  %v129_v41 = vsub.s32 5, %v4900_v39 }
  0x2b   :  { %1552 = vmatprep.subr.bf16.mxu1 %v4142_v7  ;;  %v4151_v13 = vld [vmem:[#allocation3 + $0x84] ss:$16 sps:$4 sm:$0xff]   ;;  %v4153_v14 = vld [vmem:[#allocation3 + $0x80] ss:$16 sps:$4 sm:$0xff]   ;;  %v4910_v43 = vsub.s32 0, %v4900_v39  ;;  %v99_v44 = vsub.s32 4, %v4900_v39 }
  0x2c   :  { %4134 = vset.pattern.permute.xlu0 %v4787_v3  ;;  %4136 = vset.pattern.permute.xlu1 %v4787_v3  ;;  %v4154_v15 = vld [vmem:[#allocation3 + $0xa4] ss:$16 sps:$4 sm:$0xff]   ;;  %v4156_v16 = vld [vmem:[#allocation3 + $0xa0] ss:$16 sps:$4 sm:$0xff]   ;;  %v4915_v47 = vsub.s32 2, %v4900_v39  ;;  %v163_v48 = vsub.s32 6, %v4900_v39 }
  0x2d   :  { %120 = vperm.xlu0 %4134, %v80_v1   ;;  %116 = vperm.xlu1 %4136, %v79_v2   ;;  %v4157_v17 = vld [vmem:[#allocation3 + $0xc4] ss:$16 sps:$4 sm:$0xff]   ;;  %v4159_v18 = vld [vmem:[#allocation3 + $0xc0] ss:$16 sps:$4 sm:$0xff]   ;;  %vm2095_vm3 = vcmask 1042432   ;;  %vm2062_vm4 = vcmask 1046528  }
  0x2e   :  { %1553 = vmatpush1.bf16.msra.mxu1 %v4144_v8  ;;  %v4160_v19 = vld [vmem:[#allocation3 + $0xe4] ss:$16 sps:$4 sm:$0xff]   ;;  %v4162_v20 = vld [vmem:[#allocation3 + $0xe0] ss:$16 sps:$4 sm:$0xff]   ;;  %vm3669_vm5 = vcmask 1045507  }
  0x2f   :  { %1554 = vmatprep.subr.bf16.mxu1 %v4145_v9  ;;  %v4163_v21 = vld [vmem:[#allocation3 + $0x104] ss:$16 sps:$4 sm:$0xff]   ;;  %v4165_v22 = vld [vmem:[#allocation3 + $0x100] ss:$16 sps:$4 sm:$0xff]  }
  0x30   :  { %v4166_v23 = vld [vmem:[#allocation3 + $0x124] ss:$16 sps:$4 sm:$0xff]   ;;  %v4168_v24 = vld [vmem:[#allocation3 + $0x120] ss:$16 sps:$4 sm:$0xff]  }
  0x31   :  { %4138 = vset.pattern.permute.xlu0 %v4788_v4  ;;  %4137 = vset.pattern.permute.xlu1 %v4788_v4  ;;  %v4169_v25 = vld [vmem:[#allocation3 + $0x144] ss:$16 sps:$4 sm:$0xff]   ;;  %v4171_v26 = vld [vmem:[#allocation3 + $0x140] ss:$16 sps:$4 sm:$0xff]  }
  0x32   :  { %150 = vperm.xlu0 %4138, %v79_v2   ;;  %154 = vperm.xlu1 %4137, %v80_v1   ;;  %v4172_v27 = vld [vmem:[#allocation3 + $0x164] ss:$16 sps:$4 sm:$0xff]   ;;  %v4174_v28 = vld [vmem:[#allocation3 + $0x160] ss:$16 sps:$4 sm:$0xff]  }
  0x33   :  { %1555 = vmatpush1.bf16.msra.mxu1 %v4147_v10  ;;  %v4175_v29 = vld [vmem:[#allocation3 + $0x184] ss:$16 sps:$4 sm:$0xff]   ;;  %v4177_v30 = vld [vmem:[#allocation3 + $0x180] ss:$16 sps:$4 sm:$0xff]  }
  0x34   :  { %1556 = vmatprep.subr.bf16.mxu1 %v4148_v11  ;;  %v4178_v31 = vld [vmem:[#allocation3 + $0x1a4] ss:$16 sps:$4 sm:$0xff]   ;;  %v4180_v32 = vld [vmem:[#allocation3 + $0x1a0] ss:$16 sps:$4 sm:$0xff]  }
  0x35   :  { %v4181_v33 = vld [vmem:[#allocation3 + $0x1c4] ss:$16 sps:$4 sm:$0xff]   ;;  %v4183_v34 = vld [vmem:[#allocation3 + $0x1c0] ss:$16 sps:$4 sm:$0xff]  }
  0x36   :  { %v4184_v35 = vld [vmem:[#allocation3 + $0x1e4] ss:$16 sps:$4 sm:$0xff]   ;;  %v4186_v36 = vld [vmem:[#allocation3 + $0x1e0] ss:$16 sps:$4 sm:$0xff]  }
  0x37   :  { %1557 = vmatpush1.bf16.msra.mxu1 %v4150_v12  ;;  %v4189_v37 = vld [vmem:[#allocation3 + $0x204] ss:$16 sps:$4 sm:$0xff]   ;;  %v183_v59 = vld [vmem:[%s5204_s2] sm:$0x3] }
  0x38   :  { %1558 = vmatprep.subr.bf16.mxu1 %v4151_v13  ;;  %v81_v42 = vld [vmem:[%s5203_s1] sm:$0x77]  ;;  %v188_v8 = vrot.slane %v183_v59, %v4910_v43  ;;  %v192_v9 = vrot.slane %v183_v59, %v4903_v40 }
  0x39   :  { %v126_v45 = vrot.slane %v81_v42, %v4903_v40  ;;  %v130_v46 = vrot.slane %v81_v42, %v129_v41  ;;  %v96_v49 = vrot.slane %v81_v42, %v4910_v43  ;;  %v100_v50 = vrot.slane %v81_v42, %v99_v44 }
  0x3a   :  { %v160_v55 = vrot.slane %v81_v42, %v4915_v47  ;;  %v164_v56 = vrot.slane %v81_v42, %v163_v48 }
  0x3b   :  { %1559 = vmatpush1.bf16.msra.mxu1 %v4153_v14  ;;  %v136_v53 = vrot.slane %v126_v45, %v4903_v40  ;;  %v140_v54 = vrot.slane %v130_v46, %v4903_v40  ;;  %v106_v57 = vrot.slane %v96_v49, %v4910_v43  ;;  %v110_v58 = vrot.slane %v100_v50, %v4910_v43 }
  0x3c   :  { %1560 = vmatprep.subr.bf16.mxu1 %v4154_v15  ;;  %v170_v2 = vrot.slane %v160_v55, %v4915_v47  ;;  %v174_v3 = vrot.slane %v164_v56, %v4915_v47 }
  0x3f   :  { %1561 = vmatpush1.bf16.msra.mxu1 %v4156_v16 }
  0x40   :  { %1562 = vmatprep.subr.bf16.mxu1 %v4157_v17 }
  0x43   :  { %1563 = vmatpush1.bf16.msra.mxu1 %v4159_v18 }
  0x44   :  { %1564 = vmatprep.subr.bf16.mxu1 %v4160_v19 }
  0x47   :  { %1565 = vmatpush1.bf16.msra.mxu1 %v4162_v20 }
  0x48   :  { %1566 = vmatprep.subr.bf16.mxu1 %v4163_v21 }
  0x4b   :  { %1567 = vmatpush1.bf16.msra.mxu1 %v4165_v22 }
  0x4c   :  { %1568 = vmatprep.subr.bf16.mxu1 %v4166_v23 }
  0x4f   :  { %1569 = vmatpush1.bf16.msra.mxu1 %v4168_v24 }
  0x50   :  { %1570 = vmatprep.subr.bf16.mxu1 %v4169_v25 }
  0x53   :  { %1571 = vmatpush1.bf16.msra.mxu1 %v4171_v26 }
  0x54   :  { %1572 = vmatprep.subr.bf16.mxu1 %v4172_v27 }
  0x57   :  { %1573 = vmatpush1.bf16.msra.mxu1 %v4174_v28 }
  0x58   :  { %1574 = vmatprep.subr.bf16.mxu1 %v4175_v29 }
  0x5b   :  { %1575 = vmatpush1.bf16.msra.mxu1 %v4177_v30 }
  0x5c   :  { %1576 = vmatprep.subr.bf16.mxu1 %v4178_v31 }
  0x5f   :  { %1577 = vmatpush1.bf16.msra.mxu1 %v4180_v32 }
  0x60   :  { %1578 = vmatprep.subr.bf16.mxu1 %v4181_v33 }
  0x63   :  { %1579 = vmatpush1.bf16.msra.mxu1 %v4183_v34 }
  0x64   :  { %1580 = vmatprep.subr.bf16.mxu1 %v4184_v35 }
  0x67   :  { %1581 = vmatpush1.bf16.msra.mxu1 %v4186_v36 }
  0x68   :  { %1593 = vmatprep.subr.bf16.mxu1 %v4189_v37 }
  0xa7   :  { %v85_v51 = vpop.permute.xlu1 %84  ;;  %v90_v52 = vpop.permute.xlu0 %89 }
  0xa8   :  { %v111_v4 = vmul.f32 %v106_v57, %v85_v51  ;;  %v112_v5 = vmul.f32 %v110_v58, %v85_v51  ;;  %v113_v6 = vmul.f32 %v106_v57, %v90_v52  ;;  %v114_v7 = vmul.f32 %v110_v58, %v90_v52 }
  0xac   :  { %v121_v60 = vpop.permute.xlu0 %120  ;;  %v117_v61 = vpop.permute.xlu1 %116 }
  0xad   :  { %v143_v62 = vmul.f32 %v136_v53, %v121_v60  ;;  %v144_v63 = vmul.f32 %v140_v54, %v121_v60  ;;  %v141_v0 = vmul.f32 %v136_v53, %v117_v61  ;;  %v142_v1 = vmul.f32 %v140_v54, %v117_v61 }
  0xaf   :  { %v147_v10 = vadd.f32 %v143_v62, %v113_v6  ;;  %v148_v11 = vadd.f32 %v144_v63, %v114_v7  ;;  %v145_v12 = vadd.f32 %v141_v0, %v111_v4  ;;  %v146_v13 = vadd.f32 %v142_v1, %v112_v5 }
  0xb1   :  { %v151_v14 = vpop.permute.xlu0 %150  ;;  %v155_v15 = vpop.permute.xlu1 %154 }
  0xb2   :  { %v175_v16 = vmul.f32 %v170_v2, %v151_v14  ;;  %v176_v17 = vmul.f32 %v174_v3, %v151_v14  ;;  %v177_v18 = vmul.f32 %v170_v2, %v155_v15  ;;  %v178_v19 = vmul.f32 %v174_v3, %v155_v15 }
  0xb3   :  { %v4789_v14 = vmov 1966171168  }
  0xb4   :  { %v179_v20 = vadd.f32 %v175_v16, %v145_v12  ;;  %v180_v21 = vadd.f32 %v176_v17, %v146_v13  ;;  %v181_v22 = vadd.f32 %v177_v18, %v147_v10  ;;  %v182_v23 = vadd.f32 %v178_v19, %v148_v11 }
  0xb5   :  { %v255_v15 = vunpack.c.l.s4 %v4789_v14 }
  0xb6   :  { %v4931_v24 = vadd.f32 %v188_v8, %v179_v20  ;;  %v4933_v25 = vadd.f32 %v192_v9, %v180_v21  ;;  %v4935_v26 = vadd.f32 %v188_v8, %v181_v22  ;;  %v4937_v27 = vadd.f32 %v192_v9, %v182_v23  ;;  %v199_v22 = vld [vmem:[%s5205_s3] sm:$0x3] }
  0xb7   :  { %v256_v16 = vunpack.c.0.s8 %v255_v15 }
  0xb8   :  { %v202_v28 = vsel %vm201_vm0, %v4935_v26, 0.0  ;;  %v210_v29 = vsel %vm201_vm0, %v4937_v27, 0.0 }
  0xb9   :  { %v203_v30 = vadd.f32 %v202_v28, %v4931_v24  ;;  %v211_v31 = vadd.f32 %v210_v29, %v4933_v25  ;;  %v4952_v18 = vsub.s32 %v256_v16, %v4900_v39  ;;  %v4190_v16 = vld [vmem:[#allocation3 + $0x220] ss:$16 sps:$4 sm:$0xff]  }
  0xbb   :  { %v204_v32 = vrot.slane %v203_v30, 4  ;;  %v212_v33 = vrot.slane %v211_v31, 4 }
  0xbd   :  { %v205_v34 = vadd.f32 %v204_v32, %v203_v30  ;;  %v213_v35 = vadd.f32 %v212_v33, %v211_v31 }
  0xbf   :  { %v206_v36 = vrot.slane %v205_v34, 2  ;;  %v214_v37 = vrot.slane %v213_v35, 2 }
  0xc1   :  { %v207_v38 = vadd.f32 %v206_v36, %v205_v34  ;;  %v215_v41 = vadd.f32 %v214_v37, %v213_v35  ;;  %v200_v35 = vld [vmem:[%s5206_s4] sm:$0x3] }
  0xc3   :  { %v208_v42 = vrot.slane %v207_v38, 1  ;;  %v216_v44 = vrot.slane %v215_v41, 1 }
  0xc5   :  { %v209_v45 = vadd.f32 %v208_v42, %v207_v38  ;;  %v217_v46 = vadd.f32 %v216_v44, %v215_v41 }
  0xc7   :  { %v219_v48 = vmul.f32 0.071428575, %v209_v45  ;;  %v220_v49 = vmul.f32 0.071428575, %v217_v46 }
  0xc9   :  { %v221_v50 = vsub.f32 %v4931_v24, %v219_v48  ;;  %v222_v51 = vsub.f32 %v4933_v25, %v220_v49  ;;  %v223_v52 = vsub.f32 %v4935_v26, %v219_v48  ;;  %v224_v53 = vsub.f32 %v4937_v27, %v220_v49 }
  0xcb   :  { %v225_v54 = vmul.f32 %v221_v50, %v221_v50  ;;  %v226_v55 = vmul.f32 %v222_v51, %v222_v51  ;;  %v227_v56 = vmul.f32 %v223_v52, %v223_v52  ;;  %v228_v57 = vmul.f32 %v224_v53, %v224_v53 }
  0xcd   :  { %v229_v58 = vsel %vm201_vm0, %v227_v56, 0.0  ;;  %v237_v59 = vsel %vm201_vm0, %v228_v57, 0.0 }
  0xce   :  { %v230_v60 = vadd.f32 %v229_v58, %v225_v54  ;;  %v238_v61 = vadd.f32 %v237_v59, %v226_v55 }
  0xd0   :  { %v231_v62 = vrot.slane %v230_v60, 4  ;;  %v239_v63 = vrot.slane %v238_v61, 4 }
  0xd2   :  { %v232_v0 = vadd.f32 %v231_v62, %v230_v60  ;;  %v240_v1 = vadd.f32 %v239_v63, %v238_v61 }
  0xd4   :  { %v233_v2 = vrot.slane %v232_v0, 2  ;;  %v241_v3 = vrot.slane %v240_v1, 2 }
  0xd6   :  { %v234_v4 = vadd.f32 %v233_v2, %v232_v0  ;;  %v242_v5 = vadd.f32 %v241_v3, %v240_v1 }
  0xd8   :  { %v235_v6 = vrot.slane %v234_v4, 1  ;;  %v243_v7 = vrot.slane %v242_v5, 1 }
  0xda   :  { %v236_v8 = vadd.f32 %v235_v6, %v234_v4  ;;  %v244_v9 = vadd.f32 %v243_v7, %v242_v5  ;;  %v4187_v5 = vld [vmem:[#allocation3 + $0x200] ss:$16 sps:$4 sm:$0xff]  }
  0xdc   :  { %v245_v10 = vmul.f32 0.071428575, %v236_v8  ;;  %v246_v11 = vmul.f32 0.071428575, %v244_v9 }
  0xde   :  { %v247_v12 = vadd.f32 1e-05, %v245_v10  ;;  %v248_v13 = vadd.f32 1e-05, %v246_v11  ;;  %v4192_v10 = vld [vmem:[#allocation3 + $0x224] ss:$16 sps:$4 sm:$0xff]  }
  0xe0   :  { %4716 = vrsqrt.f32 %v247_v12 }
  0xe1   :  { %4718 = vrsqrt.f32 %v248_v13 }
  0xea   :  { %v4717_v17 = vpop.eup %4716 }
  0xeb   :  { %v4719_v19 = vpop.eup %4718 }
  0xec   :  { %v253_v20 = vcombine.low %v4717_v17, %v4719_v19  ;;  %v4195_v17 = vld [vmem:[#allocation3 + $0x244] ss:$16 sps:$4 sm:$0xff]   ;;  %v4193_v19 = vld [vmem:[#allocation3 + $0x240] ss:$16 sps:$4 sm:$0xff]  }
  0xee   :  { %v260_v21 = vrot.slane %v253_v20, %v4952_v18  ;;  %v4198_v20 = vld [vmem:[#allocation3 + $0x264] ss:$16 sps:$4 sm:$0xff]  }
  0xf0   :  { %v267_v23 = vrot.slane %v260_v21, %v4952_v18  ;;  %v4196_v21 = vld [vmem:[#allocation3 + $0x260] ss:$16 sps:$4 sm:$0xff]  }
  0xf2   :  { %v269_v28 = vmul.f32 %v267_v23, %v199_v22  ;;  %v4201_v22 = vld [vmem:[#allocation3 + $0x284] ss:$16 sps:$4 sm:$0xff]   ;;  %v4199_v23 = vld [vmem:[#allocation3 + $0x280] ss:$16 sps:$4 sm:$0xff]  }
  0xf4   :  { %v274_v29 = vrot.slane %v269_v28, %v4910_v43  ;;  %v278_v30 = vrot.slane %v269_v28, %v4903_v40  ;;  %v4204_v28 = vld [vmem:[#allocation3 + $0x2a4] ss:$16 sps:$4 sm:$0xff]  }
  0xf6   :  { %v281_v31 = vmul.f32 %v274_v29, %v219_v48  ;;  %v282_v32 = vmul.f32 %v278_v30, %v220_v49  ;;  %v304_v38 = vmul.f32 %v274_v29, %v4935_v26  ;;  %v305_v41 = vmul.f32 %v278_v30, %v4937_v27 }
  0xf7   :  { %v303_v42 = vmul.f32 %v278_v30, %v4933_v25  ;;  %v302_v45 = vmul.f32 %v274_v29, %v4931_v24  ;;  %v4202_v29 = vld [vmem:[#allocation3 + $0x2a0] ss:$16 sps:$4 sm:$0xff]   ;;  %v4207_v30 = vld [vmem:[#allocation3 + $0x2c4] ss:$16 sps:$4 sm:$0xff]  }
  0xf8   :  { %v285_v33 = vcombine.low %v281_v31, %v282_v32  ;;  %v4205_v31 = vld [vmem:[#allocation3 + $0x2c0] ss:$16 sps:$4 sm:$0xff]   ;;  %v4210_v32 = vld [vmem:[#allocation3 + $0x2e4] ss:$16 sps:$4 sm:$0xff]  }
  0xfa   :  { %v292_v34 = vrot.slane %v285_v33, %v4952_v18  ;;  %v4208_v33 = vld [vmem:[#allocation3 + $0x2e0] ss:$16 sps:$4 sm:$0xff]  }
  0xfc   :  { %v299_v36 = vrot.slane %v292_v34, %v4952_v18  ;;  %v4213_v34 = vld [vmem:[#allocation3 + $0x304] ss:$16 sps:$4 sm:$0xff]  }
  0xfe   :  { %v301_v37 = vsub.f32 %v200_v35, %v299_v36  ;;  %v4211_v35 = vld [vmem:[#allocation3 + $0x300] ss:$16 sps:$4 sm:$0xff]   ;;  %v4216_v36 = vld [vmem:[#allocation3 + $0x324] ss:$16 sps:$4 sm:$0xff]  }
 0x100   :  { %v314_v44 = vrot.slane %v301_v37, %v4903_v40  ;;  %v310_v46 = vrot.slane %v301_v37, %v4910_v43  ;;  %v4214_v37 = vld [vmem:[#allocation3 + $0x320] ss:$16 sps:$4 sm:$0xff]  }
 0x102   :  { %v318_v48 = vadd.f32 %v314_v44, %v303_v42  ;;  %v320_v49 = vadd.f32 %v314_v44, %v305_v41  ;;  %v317_v50 = vadd.f32 %v310_v46, %v302_v45  ;;  %v319_v51 = vadd.f32 %v310_v46, %v304_v38  ;;  %v4219_v38 = vld [vmem:[#allocation3 + $0x344] ss:$16 sps:$4 sm:$0xff]   ;;  %v4217_v41 = vld [vmem:[#allocation3 + $0x340] ss:$16 sps:$4 sm:$0xff]  }
 0x103   :  { %v4222_v42 = vld [vmem:[#allocation3 + $0x364] ss:$16 sps:$4 sm:$0xff]   ;;  %v4220_v44 = vld [vmem:[#allocation3 + $0x360] ss:$16 sps:$4 sm:$0xff]  }
 0x104   :  { %v322_v52 = vmax.f32 %v318_v48, 0.0  ;;  %v324_v53 = vmax.f32 %v320_v49, 0.0  ;;  %v321_v54 = vmax.f32 %v317_v50, 0.0  ;;  %v323_v55 = vmax.f32 %v319_v51, 0.0  ;;  %v4225_v45 = vld [vmem:[#allocation3 + $0x384] ss:$16 sps:$4 sm:$0xff]  }
 0x105   :  { %v4223_v46 = vld [vmem:[#allocation3 + $0x380] ss:$16 sps:$4 sm:$0xff]   ;;  %v4228_v48 = vld [vmem:[#allocation3 + $0x3a4] ss:$16 sps:$4 sm:$0xff]  }
 0x106   :  { %v332_v26 = vrot.slane %v322_v52, 2  ;;  %v340_v56 = vrot.slane %v324_v53, 2  ;;  %v331_v27 = vrot.slane %v321_v54, 2  ;;  %v339_v57 = vrot.slane %v323_v55, 2  ;;  %v4226_v49 = vld [vmem:[#allocation3 + $0x3a0] ss:$16 sps:$4 sm:$0xff]  }
 0x107   :  { %v328_v25 = vrot.slane %v322_v52, 1  ;;  %v338_v58 = vrot.slane %v324_v53, 1  ;;  %v327_v59 = vrot.slane %v321_v54, 1  ;;  %v337_v60 = vrot.slane %v323_v55, 1  ;;  %v4231_v50 = vld [vmem:[#allocation3 + $0x3c4] ss:$16 sps:$4 sm:$0xff]  }
 0x108   :  { %v342_v24 = vsel %vm201_vm0, %v332_v26, %v340_v56  ;;  %v341_v61 = vsel %vm201_vm0, %v331_v27, %v339_v57  ;;  %v349_v62 = vrot.slane %v340_v56, 2  ;;  %v347_v63 = vrot.slane %v339_v57, 2  ;;  %v4229_v51 = vld [vmem:[#allocation3 + $0x3c0] ss:$16 sps:$4 sm:$0xff]  }
 0x109   :  { %v365_v0 = vsel %vm363_vm1, %v322_v52, %v342_v24  ;;  %v364_v1 = vsel %vm363_vm1, %v321_v54, %v341_v61  ;;  %v345_v2 = vrot.slane %v338_v58, 2  ;;  %v343_v3 = vrot.slane %v337_v60, 2  ;;  %v4234_v52 = vld [vmem:[#allocation3 + $0x3e4] ss:$16 sps:$4 sm:$0xff]   ;;  %v4232_v53 = vld [vmem:[#allocation3 + $0x3e0] ss:$16 sps:$4 sm:$0xff]  }
 0x10a   :  { %v4976_v4 = vpack.c.bf16 %v340_v56, %v365_v0  ;;  %v4978_v6 = vpack.c.bf16 %v339_v57, %v364_v1  ;;  %v369_v7 = vsel %vm363_vm1, %v332_v26, %v349_v62  ;;  %v368_v8 = vsel %vm363_vm1, %v331_v27, %v347_v63  ;;  %v4237_v54 = vld [vmem:[#allocation3 + $0x404] ss:$16 sps:$4 sm:$0xff]   ;;  %v4235_v55 = vld [vmem:[#allocation3 + $0x400] ss:$16 sps:$4 sm:$0xff]  }
 0x10b   :  { %v367_v9 = vsel %vm363_vm1, %v328_v25, %v345_v2  ;;  %v366_v11 = vsel %vm363_vm1, %v327_v59, %v343_v3  ;;  %v4984_v12 = vpack.c.bf16 %v349_v62, %v369_v7  ;;  %v4986_v13 = vpack.c.bf16 %v347_v63, %v368_v8  ;;  %v4240_v26 = vld [vmem:[#allocation3 + $0x424] ss:$16 sps:$4 sm:$0xff]   ;;  %v4238_v56 = vld [vmem:[#allocation3 + $0x420] ss:$16 sps:$4 sm:$0xff]  }
 0x10c   :  { %1582 = vmatprep.mubr.bf16.mxu1 %v4976_v4  ;;  %v4989_v14 = vpack.c.bf16 %v345_v2, %v367_v9  ;;  %v4991_v15 = vpack.c.bf16 %v343_v3, %v366_v11  ;;  %v4243_v27 = vld [vmem:[#allocation3 + $0x444] ss:$16 sps:$4 sm:$0xff]   ;;  %v4241_v57 = vld [vmem:[#allocation3 + $0x440] ss:$16 sps:$4 sm:$0xff]  }
 0x10d   :  { %1583 = vmatmul.mubr.bf16.vlgmr.msra.gmra.mrb[0].mxu1 %v4978_v6  ;;  %v4246_v25 = vld [vmem:[#allocation3 + $0x464] ss:$16 sps:$4 sm:$0xff]   ;;  %v4244_v58 = vld [vmem:[#allocation3 + $0x460] ss:$16 sps:$4 sm:$0xff]  }
 0x10e   :  { %1594 = vmatpush1.bf16.msra.mxu1 %v4187_v5  ;;  %1625 = vmatprep.mubr.bf16.mxu1 %v4989_v14  ;;  %v4249_v59 = vld [vmem:[#allocation3 + $0x484] ss:$16 sps:$4 sm:$0xff]   ;;  %v4247_v60 = vld [vmem:[#allocation3 + $0x480] ss:$16 sps:$4 sm:$0xff]  }
 0x10f   :  { %1595 = vmatprep.subr.bf16.mxu1 %v4192_v10  ;;  %v4252_v24 = vld [vmem:[#allocation3 + $0x4a4] ss:$16 sps:$4 sm:$0xff]   ;;  %v4250_v61 = vld [vmem:[#allocation3 + $0x4a0] ss:$16 sps:$4 sm:$0xff]  }
 0x110   :  { %v4255_v62 = vld [vmem:[#allocation3 + $0x4c4] ss:$16 sps:$4 sm:$0xff]   ;;  %v4253_v63 = vld [vmem:[#allocation3 + $0x4c0] ss:$16 sps:$4 sm:$0xff]  }
 0x111   :  { %v4258_v0 = vld [vmem:[#allocation3 + $0x4e4] ss:$16 sps:$4 sm:$0xff]   ;;  %v4256_v1 = vld [vmem:[#allocation3 + $0x4e0] ss:$16 sps:$4 sm:$0xff]  }
 0x112   :  { %1596 = vmatpush1.bf16.msra.mxu1 %v4190_v16  ;;  %v4261_v2 = vld [vmem:[#allocation3 + $0x504] ss:$16 sps:$4 sm:$0xff]   ;;  %v4259_v3 = vld [vmem:[#allocation3 + $0x500] ss:$16 sps:$4 sm:$0xff]  }
 0x113   :  { %1597 = vmatprep.subr.bf16.mxu1 %v4195_v17  ;;  %v4264_v5 = vld [vmem:[#allocation3 + $0x524] ss:$16 sps:$4 sm:$0xff]   ;;  %v4262_v7 = vld [vmem:[#allocation3 + $0x520] ss:$16 sps:$4 sm:$0xff]  }
 0x114   :  { %v4267_v8 = vld [vmem:[#allocation3 + $0x544] ss:$16 sps:$4 sm:$0xff]   ;;  %v4265_v9 = vld [vmem:[#allocation3 + $0x540] ss:$16 sps:$4 sm:$0xff]  }
 0x115   :  { %v4270_v10 = vld [vmem:[#allocation3 + $0x564] ss:$16 sps:$4 sm:$0xff]   ;;  %v4268_v11 = vld [vmem:[#allocation3 + $0x560] ss:$16 sps:$4 sm:$0xff]  }
 0x116   :  { %1598 = vmatpush1.bf16.msra.mxu1 %v4193_v19  ;;  %v4273_v16 = vld [vmem:[#allocation3 + $0x584] ss:$16 sps:$4 sm:$0xff]   ;;  %v4271_v17 = vld [vmem:[#allocation3 + $0x580] ss:$16 sps:$4 sm:$0xff]  }
 0x117   :  { %1599 = vmatprep.subr.bf16.mxu1 %v4198_v20  ;;  %v4276_v19 = vld [vmem:[#allocation3 + $0x5a4] ss:$16 sps:$4 sm:$0xff]   ;;  %v4274_v20 = vld [vmem:[#allocation3 + $0x5a0] ss:$16 sps:$4 sm:$0xff]  }
 0x11a   :  { %1600 = vmatpush1.bf16.msra.mxu1 %v4196_v21  ;;  %v4279_v21 = vld [vmem:[#allocation3 + $0x5c4] ss:$16 sps:$4 sm:$0xff]  }
 0x11b   :  { %1601 = vmatprep.subr.bf16.mxu1 %v4201_v22  ;;  %v4277_v22 = vld [vmem:[#allocation3 + $0x5c0] ss:$16 sps:$4 sm:$0xff]  }
 0x11e   :  { %1602 = vmatpush1.bf16.msra.mxu1 %v4199_v23  ;;  %v4282_v23 = vld [vmem:[#allocation3 + $0x5e4] ss:$16 sps:$4 sm:$0xff]  }
 0x11f   :  { %1603 = vmatprep.subr.bf16.mxu1 %v4204_v28  ;;  %v4280_v28 = vld [vmem:[#allocation3 + $0x5e0] ss:$16 sps:$4 sm:$0xff]  }
 0x122   :  { %1604 = vmatpush1.bf16.msra.mxu1 %v4202_v29  ;;  %v4285_v29 = vld [vmem:[#allocation3 + $0xc] ss:$16 sps:$4 sm:$0xff]  }
 0x123   :  { %1605 = vmatprep.subr.bf16.mxu1 %v4207_v30  ;;  %v4283_v30 = vld [vmem:[#allocation3 + $0x8] ss:$16 sps:$4 sm:$0xff]  }
 0x126   :  { %1606 = vmatpush1.bf16.msra.mxu1 %v4205_v31  ;;  %v4288_v31 = vld [vmem:[#allocation3 + $0x2c] ss:$16 sps:$4 sm:$0xff]  }
 0x127   :  { %1607 = vmatprep.subr.bf16.mxu1 %v4210_v32  ;;  %v4286_v32 = vld [vmem:[#allocation3 + $0x28] ss:$16 sps:$4 sm:$0xff]  }
 0x12a   :  { %1608 = vmatpush1.bf16.msra.mxu1 %v4208_v33  ;;  %v4291_v33 = vld [vmem:[#allocation3 + $0x4c] ss:$16 sps:$4 sm:$0xff]  }
 0x12b   :  { %1609 = vmatprep.subr.bf16.mxu1 %v4213_v34  ;;  %v4289_v34 = vld [vmem:[#allocation3 + $0x48] ss:$16 sps:$4 sm:$0xff]  }
 0x12e   :  { %1610 = vmatpush1.bf16.msra.mxu1 %v4211_v35  ;;  %v4294_v35 = vld [vmem:[#allocation3 + $0x6c] ss:$16 sps:$4 sm:$0xff]  }
 0x12f   :  { %1611 = vmatprep.subr.bf16.mxu1 %v4216_v36  ;;  %v4292_v36 = vld [vmem:[#allocation3 + $0x68] ss:$16 sps:$4 sm:$0xff]  }
 0x132   :  { %1612 = vmatpush1.bf16.msra.mxu1 %v4214_v37  ;;  %v4297_v37 = vld [vmem:[#allocation3 + $0x8c] ss:$16 sps:$4 sm:$0xff]  }
 0x133   :  { %1613 = vmatprep.subr.bf16.mxu1 %v4219_v38  ;;  %v4295_v38 = vld [vmem:[#allocation3 + $0x88] ss:$16 sps:$4 sm:$0xff]  }
 0x136   :  { %1614 = vmatpush1.bf16.msra.mxu1 %v4217_v41  ;;  %v4300_v41 = vld [vmem:[#allocation3 + $0xac] ss:$16 sps:$4 sm:$0xff]  }
 0x137   :  { %1615 = vmatprep.subr.bf16.mxu1 %v4222_v42  ;;  %v4298_v42 = vld [vmem:[#allocation3 + $0xa8] ss:$16 sps:$4 sm:$0xff]  }
 0x13a   :  { %1616 = vmatpush1.bf16.msra.mxu1 %v4220_v44  ;;  %v4303_v44 = vld [vmem:[#allocation3 + $0xcc] ss:$16 sps:$4 sm:$0xff]  }
 0x13b   :  { %1617 = vmatprep.subr.bf16.mxu1 %v4225_v45  ;;  %v4306_v45 = vld [vmem:[#allocation3 + $0xec] ss:$16 sps:$4 sm:$0xff]  }
 0x13e   :  { %1618 = vmatpush1.bf16.msra.mxu1 %v4223_v46  ;;  %v4304_v46 = vld [vmem:[#allocation3 + $0xe8] ss:$16 sps:$4 sm:$0xff]  }
 0x13f   :  { %1619 = vmatprep.subr.bf16.mxu1 %v4228_v48  ;;  %v4309_v48 = vld [vmem:[#allocation3 + $0x10c] ss:$16 sps:$4 sm:$0xff]  }
 0x142   :  { %1620 = vmatpush1.bf16.msra.mxu1 %v4226_v49  ;;  %v4307_v49 = vld [vmem:[#allocation3 + $0x108] ss:$16 sps:$4 sm:$0xff]  }
 0x143   :  { %1621 = vmatprep.subr.bf16.mxu1 %v4231_v50  ;;  %v4312_v50 = vld [vmem:[#allocation3 + $0x12c] ss:$16 sps:$4 sm:$0xff]  }
 0x146   :  { %1622 = vmatpush1.bf16.msra.mxu1 %v4229_v51  ;;  %v4310_v51 = vld [vmem:[#allocation3 + $0x128] ss:$16 sps:$4 sm:$0xff]  }
 0x147   :  { %1623 = vmatprep.subr.bf16.mxu1 %v4234_v52  ;;  %v4315_v52 = vld [vmem:[#allocation3 + $0x14c] ss:$16 sps:$4 sm:$0xff]  }
 0x14a   :  { %1624 = vmatpush1.bf16.msra.mxu1 %v4232_v53  ;;  %v4313_v53 = vld [vmem:[#allocation3 + $0x148] ss:$16 sps:$4 sm:$0xff]  }
 0x14b   :  { %1636 = vmatprep.subr.bf16.mxu1 %v4237_v54  ;;  %v4318_v54 = vld [vmem:[#allocation3 + $0x16c] ss:$16 sps:$4 sm:$0xff]  }
 0x14d   :  { %1626 = vmatmul.mubr.bf16.vlgmr.msra.gmra.mrb[0].mxu1 %v4991_v15 }
 0x14e   :  { %1637 = vmatpush1.bf16.msra.mxu1 %v4235_v55  ;;  %1668 = vmatprep.mubr.bf16.mxu1 %v4984_v12  ;;  %v4316_v55 = vld [vmem:[#allocation3 + $0x168] ss:$16 sps:$4 sm:$0xff]  }
 0x14f   :  { %1638 = vmatprep.subr.bf16.mxu1 %v4240_v26  ;;  %v4321_v26 = vld [vmem:[#allocation3 + $0x18c] ss:$16 sps:$4 sm:$0xff]  }
 0x152   :  { %1639 = vmatpush1.bf16.msra.mxu1 %v4238_v56  ;;  %v4319_v56 = vld [vmem:[#allocation3 + $0x188] ss:$16 sps:$4 sm:$0xff]  }
 0x153   :  { %1640 = vmatprep.subr.bf16.mxu1 %v4243_v27  ;;  %v4324_v27 = vld [vmem:[#allocation3 + $0x1ac] ss:$16 sps:$4 sm:$0xff]  }
 0x156   :  { %1641 = vmatpush1.bf16.msra.mxu1 %v4241_v57  ;;  %v4322_v57 = vld [vmem:[#allocation3 + $0x1a8] ss:$16 sps:$4 sm:$0xff]  }
 0x157   :  { %1642 = vmatprep.subr.bf16.mxu1 %v4246_v25  ;;  %v4327_v25 = vld [vmem:[#allocation3 + $0x1cc] ss:$16 sps:$4 sm:$0xff]  }
 0x15a   :  { %1643 = vmatpush1.bf16.msra.mxu1 %v4244_v58  ;;  %v4325_v58 = vld [vmem:[#allocation3 + $0x1c8] ss:$16 sps:$4 sm:$0xff]  }
 0x15b   :  { %1644 = vmatprep.subr.bf16.mxu1 %v4249_v59  ;;  %v4330_v59 = vld [vmem:[#allocation3 + $0x1ec] ss:$16 sps:$4 sm:$0xff]  }
 0x15e   :  { %1645 = vmatpush1.bf16.msra.mxu1 %v4247_v60  ;;  %v4328_v60 = vld [vmem:[#allocation3 + $0x1e8] ss:$16 sps:$4 sm:$0xff]  }
 0x15f   :  { %1646 = vmatprep.subr.bf16.mxu1 %v4252_v24  ;;  %v4333_v24 = vld [vmem:[#allocation3 + $0x20c] ss:$16 sps:$4 sm:$0xff]  }
 0x162   :  { %1647 = vmatpush1.bf16.msra.mxu1 %v4250_v61  ;;  %v4331_v61 = vld [vmem:[#allocation3 + $0x208] ss:$16 sps:$4 sm:$0xff]  }
 0x163   :  { %1648 = vmatprep.subr.bf16.mxu1 %v4255_v62  ;;  %v4336_v62 = vld [vmem:[#allocation3 + $0x22c] ss:$16 sps:$4 sm:$0xff]  }
 0x166   :  { %1649 = vmatpush1.bf16.msra.mxu1 %v4253_v63  ;;  %v4334_v63 = vld [vmem:[#allocation3 + $0x228] ss:$16 sps:$4 sm:$0xff]  }
 0x167   :  { %1650 = vmatprep.subr.bf16.mxu1 %v4258_v0  ;;  %v4339_v0 = vld [vmem:[#allocation3 + $0x24c] ss:$16 sps:$4 sm:$0xff]  }
 0x16a   :  { %1651 = vmatpush1.bf16.msra.mxu1 %v4256_v1  ;;  %v4337_v1 = vld [vmem:[#allocation3 + $0x248] ss:$16 sps:$4 sm:$0xff]  }
 0x16b   :  { %1652 = vmatprep.subr.bf16.mxu1 %v4261_v2  ;;  %v4342_v2 = vld [vmem:[#allocation3 + $0x26c] ss:$16 sps:$4 sm:$0xff]  }
 0x16e   :  { %1653 = vmatpush1.bf16.msra.mxu1 %v4259_v3  ;;  %v4340_v3 = vld [vmem:[#allocation3 + $0x268] ss:$16 sps:$4 sm:$0xff]  }
 0x16f   :  { %1654 = vmatprep.subr.bf16.mxu1 %v4264_v5  ;;  %v4345_v5 = vld [vmem:[#allocation3 + $0x28c] ss:$16 sps:$4 sm:$0xff]  }
 0x172   :  { %1655 = vmatpush1.bf16.msra.mxu1 %v4262_v7  ;;  %v4343_v7 = vld [vmem:[#allocation3 + $0x288] ss:$16 sps:$4 sm:$0xff]  }
 0x173   :  { %1656 = vmatprep.subr.bf16.mxu1 %v4267_v8  ;;  %v4348_v8 = vld [vmem:[#allocation3 + $0x2ac] ss:$16 sps:$4 sm:$0xff]  }
 0x176   :  { %1657 = vmatpush1.bf16.msra.mxu1 %v4265_v9  ;;  %v4351_v9 = vld [vmem:[#allocation3 + $0x2cc] ss:$16 sps:$4 sm:$0xff]  }
 0x177   :  { %1658 = vmatprep.subr.bf16.mxu1 %v4270_v10  ;;  %v4354_v10 = vld [vmem:[#allocation3 + $0x2ec] ss:$16 sps:$4 sm:$0xff]  }
 0x17a   :  { %1659 = vmatpush1.bf16.msra.mxu1 %v4268_v11  ;;  %v4352_v11 = vld [vmem:[#allocation3 + $0x2e8] ss:$16 sps:$4 sm:$0xff]  }
 0x17b   :  { %1660 = vmatprep.subr.bf16.mxu1 %v4273_v16  ;;  %v4357_v16 = vld [vmem:[#allocation3 + $0x30c] ss:$16 sps:$4 sm:$0xff]  }
 0x17e   :  { %1661 = vmatpush1.bf16.msra.mxu1 %v4271_v17  ;;  %v4355_v17 = vld [vmem:[#allocation3 + $0x308] ss:$16 sps:$4 sm:$0xff]  }
 0x17f   :  { %1662 = vmatprep.subr.bf16.mxu1 %v4276_v19  ;;  %v4360_v19 = vld [vmem:[#allocation3 + $0x32c] ss:$16 sps:$4 sm:$0xff]  }
 0x182   :  { %1663 = vmatpush1.bf16.msra.mxu1 %v4274_v20  ;;  %v4358_v20 = vld [vmem:[#allocation3 + $0x328] ss:$16 sps:$4 sm:$0xff]  }
 0x183   :  { %1664 = vmatprep.subr.bf16.mxu1 %v4279_v21  ;;  %v4363_v21 = vld [vmem:[#allocation3 + $0x34c] ss:$16 sps:$4 sm:$0xff]  }
 0x186   :  { %1665 = vmatpush1.bf16.msra.mxu1 %v4277_v22  ;;  %v4361_v22 = vld [vmem:[#allocation3 + $0x348] ss:$16 sps:$4 sm:$0xff]  }
 0x187   :  { %1666 = vmatprep.subr.bf16.mxu1 %v4282_v23  ;;  %v4366_v23 = vld [vmem:[#allocation3 + $0x36c] ss:$16 sps:$4 sm:$0xff]  }
 0x18a   :  { %1667 = vmatpush1.bf16.msra.mxu1 %v4280_v28  ;;  %v4364_v28 = vld [vmem:[#allocation3 + $0x368] ss:$16 sps:$4 sm:$0xff]  }
 0x18b   :  { %1679 = vmatprep.subr.bf16.mxu1 %v4285_v29  ;;  %v4369_v29 = vld [vmem:[#allocation3 + $0x38c] ss:$16 sps:$4 sm:$0xff]  }
 0x18d   :  { %1669 = vmatmul.mubr.bf16.vlgmr.msra.gmra.mrb[0].mxu1 %v4986_v13 }
 0x18e   :  { %1680 = vmatpush1.bf16.msra.mxu1 %v4283_v30  ;;  %1711 = vmatprep.mubr.bf16.mxu1 %v4976_v4  ;;  %v4301_v4 = vld [vmem:[#allocation3 + $0xc8] ss:$16 sps:$4 sm:$0xff]  }
 0x18f   :  { %1681 = vmatprep.subr.bf16.mxu1 %v4288_v31  ;;  %v4367_v30 = vld [vmem:[#allocation3 + $0x388] ss:$16 sps:$4 sm:$0xff]   ;;  %v4372_v31 = vld [vmem:[#allocation3 + $0x3ac] ss:$16 sps:$4 sm:$0xff]  }
 0x192   :  { %1682 = vmatpush1.bf16.msra.mxu1 %v4286_v32  ;;  %v4370_v32 = vld [vmem:[#allocation3 + $0x3a8] ss:$16 sps:$4 sm:$0xff]  }
 0x193   :  { %1683 = vmatprep.subr.bf16.mxu1 %v4291_v33  ;;  %v4375_v33 = vld [vmem:[#allocation3 + $0x3cc] ss:$16 sps:$4 sm:$0xff]  }
 0x196   :  { %1684 = vmatpush1.bf16.msra.mxu1 %v4289_v34  ;;  %v4373_v34 = vld [vmem:[#allocation3 + $0x3c8] ss:$16 sps:$4 sm:$0xff]  }
 0x197   :  { %1685 = vmatprep.subr.bf16.mxu1 %v4294_v35  ;;  %v4378_v35 = vld [vmem:[#allocation3 + $0x3ec] ss:$16 sps:$4 sm:$0xff]  }
 0x19a   :  { %1686 = vmatpush1.bf16.msra.mxu1 %v4292_v36  ;;  %v4376_v36 = vld [vmem:[#allocation3 + $0x3e8] ss:$16 sps:$4 sm:$0xff]  }
 0x19b   :  { %1687 = vmatprep.subr.bf16.mxu1 %v4297_v37  ;;  %v4381_v37 = vld [vmem:[#allocation3 + $0x40c] ss:$16 sps:$4 sm:$0xff]  }
 0x19e   :  { %1688 = vmatpush1.bf16.msra.mxu1 %v4295_v38  ;;  %v4379_v38 = vld [vmem:[#allocation3 + $0x408] ss:$16 sps:$4 sm:$0xff]  }
 0x19f   :  { %1689 = vmatprep.subr.bf16.mxu1 %v4300_v41  ;;  %v4384_v41 = vld [vmem:[#allocation3 + $0x42c] ss:$16 sps:$4 sm:$0xff]  }
 0x1a2   :  { %1690 = vmatpush1.bf16.msra.mxu1 %v4298_v42  ;;  %v4382_v42 = vld [vmem:[#allocation3 + $0x428] ss:$16 sps:$4 sm:$0xff]  }
 0x1a3   :  { %1691 = vmatprep.subr.bf16.mxu1 %v4303_v44  ;;  %v4387_v44 = vld [vmem:[#allocation3 + $0x44c] ss:$16 sps:$4 sm:$0xff]  }
 0x1a6   :  { %1692 = vmatpush1.bf16.msra.mxu1 %v4301_v4  ;;  %v4385_v4 = vld [vmem:[#allocation3 + $0x448] ss:$16 sps:$4 sm:$0xff]  }
 0x1a7   :  { %1693 = vmatprep.subr.bf16.mxu1 %v4306_v45  ;;  %v4390_v45 = vld [vmem:[#allocation3 + $0x46c] ss:$16 sps:$4 sm:$0xff]  }
 0x1aa   :  { %1694 = vmatpush1.bf16.msra.mxu1 %v4304_v46  ;;  %v4388_v46 = vld [vmem:[#allocation3 + $0x468] ss:$16 sps:$4 sm:$0xff]  }
 0x1ab   :  { %1695 = vmatprep.subr.bf16.mxu1 %v4309_v48  ;;  %v4393_v48 = vld [vmem:[#allocation3 + $0x48c] ss:$16 sps:$4 sm:$0xff]  }
 0x1ae   :  { %1696 = vmatpush1.bf16.msra.mxu1 %v4307_v49  ;;  %v4391_v49 = vld [vmem:[#allocation3 + $0x488] ss:$16 sps:$4 sm:$0xff]  }
 0x1af   :  { %1697 = vmatprep.subr.bf16.mxu1 %v4312_v50  ;;  %v4396_v50 = vld [vmem:[#allocation3 + $0x4ac] ss:$16 sps:$4 sm:$0xff]  }
 0x1b2   :  { %1698 = vmatpush1.bf16.msra.mxu1 %v4310_v51  ;;  %v4399_v51 = vld [vmem:[#allocation3 + $0x4cc] ss:$16 sps:$4 sm:$0xff]  }
 0x1b3   :  { %1699 = vmatprep.subr.bf16.mxu1 %v4315_v52  ;;  %v4402_v52 = vld [vmem:[#allocation3 + $0x4ec] ss:$16 sps:$4 sm:$0xff]  }
 0x1b6   :  { %1700 = vmatpush1.bf16.msra.mxu1 %v4313_v53  ;;  %v4400_v53 = vld [vmem:[#allocation3 + $0x4e8] ss:$16 sps:$4 sm:$0xff]  }
 0x1b7   :  { %1701 = vmatprep.subr.bf16.mxu1 %v4318_v54  ;;  %v4405_v54 = vld [vmem:[#allocation3 + $0x50c] ss:$16 sps:$4 sm:$0xff]  }
 0x1ba   :  { %1702 = vmatpush1.bf16.msra.mxu1 %v4316_v55  ;;  %v4403_v55 = vld [vmem:[#allocation3 + $0x508] ss:$16 sps:$4 sm:$0xff]  }
 0x1bb   :  { %1703 = vmatprep.subr.bf16.mxu1 %v4321_v26  ;;  %v4408_v26 = vld [vmem:[#allocation3 + $0x52c] ss:$16 sps:$4 sm:$0xff]  }
 0x1be   :  { %1704 = vmatpush1.bf16.msra.mxu1 %v4319_v56  ;;  %v4406_v56 = vld [vmem:[#allocation3 + $0x528] ss:$16 sps:$4 sm:$0xff]  }
 0x1bf   :  { %1705 = vmatprep.subr.bf16.mxu1 %v4324_v27  ;;  %v4411_v27 = vld [vmem:[#allocation3 + $0x54c] ss:$16 sps:$4 sm:$0xff]  }
 0x1c2   :  { %1706 = vmatpush1.bf16.msra.mxu1 %v4322_v57  ;;  %v4409_v57 = vld [vmem:[#allocation3 + $0x548] ss:$16 sps:$4 sm:$0xff]  }
 0x1c3   :  { %1707 = vmatprep.subr.bf16.mxu1 %v4327_v25  ;;  %v4414_v25 = vld [vmem:[#allocation3 + $0x56c] ss:$16 sps:$4 sm:$0xff]  }
 0x1c6   :  { %1708 = vmatpush1.bf16.msra.mxu1 %v4325_v58  ;;  %v4412_v58 = vld [vmem:[#allocation3 + $0x568] ss:$16 sps:$4 sm:$0xff]  }
 0x1c7   :  { %1709 = vmatprep.subr.bf16.mxu1 %v4330_v59  ;;  %v4417_v59 = vld [vmem:[#allocation3 + $0x58c] ss:$16 sps:$4 sm:$0xff]  }
 0x1ca   :  { %1710 = vmatpush1.bf16.msra.mxu1 %v4328_v60  ;;  %v4415_v60 = vld [vmem:[#allocation3 + $0x588] ss:$16 sps:$4 sm:$0xff]  }
 0x1cb   :  { %1722 = vmatprep.subr.bf16.mxu1 %v4333_v24  ;;  %v4420_v24 = vld [vmem:[#allocation3 + $0x5ac] ss:$16 sps:$4 sm:$0xff]  }
 0x1cd   :  { %1712 = vmatmul.mubr.bf16.vlgmr.msra.gmra.mrb[4].mxu1 %v4978_v6  ;;  %v4346_v6 = vld [vmem:[#allocation3 + $0x2a8] ss:$16 sps:$4 sm:$0xff]  }
 0x1ce   :  { %1723 = vmatpush1.bf16.msra.mxu1 %v4331_v61  ;;  %1754 = vmatprep.mubr.bf16.mxu1 %v4989_v14  ;;  %v4349_v14 = vld [vmem:[#allocation3 + $0x2c8] ss:$16 sps:$4 sm:$0xff]  }
 0x1cf   :  { %1724 = vmatprep.subr.bf16.mxu1 %v4336_v62  ;;  %v4418_v61 = vld [vmem:[#allocation3 + $0x5a8] ss:$16 sps:$4 sm:$0xff]   ;;  %v4423_v62 = vld [vmem:[#allocation3 + $0x5cc] ss:$16 sps:$4 sm:$0xff]  }
 0x1d2   :  { %1725 = vmatpush1.bf16.msra.mxu1 %v4334_v63  ;;  %v4421_v63 = vld [vmem:[#allocation3 + $0x5c8] ss:$16 sps:$4 sm:$0xff]  }
 0x1d3   :  { %1726 = vmatprep.subr.bf16.mxu1 %v4339_v0  ;;  %v4426_v0 = vld [vmem:[#allocation3 + $0x5ec] ss:$16 sps:$4 sm:$0xff]  }
 0x1d6   :  { %1727 = vmatpush1.bf16.msra.mxu1 %v4337_v1  ;;  %v4424_v1 = vld [vmem:[#allocation3 + $0x5e8] ss:$16 sps:$4 sm:$0xff]  }
 0x1d7   :  { %1728 = vmatprep.subr.bf16.mxu1 %v4342_v2 }
 0x1da   :  { %1729 = vmatpush1.bf16.msra.mxu1 %v4340_v3 }
 0x1db   :  { %1730 = vmatprep.subr.bf16.mxu1 %v4345_v5 }
 0x1de   :  { %1731 = vmatpush1.bf16.msra.mxu1 %v4343_v7 }
 0x1df   :  { %1732 = vmatprep.subr.bf16.mxu1 %v4348_v8  ;;  %v4427_v8 = vld [vmem:[#allocation5 + $0x4] ss:$8 sps:$4 sm:$0xff]  }
 0x1e0   :  { %3284 = vmatprep.subr.bf16.mxu0 %v4427_v8 }
 0x1e2   :  { %1733 = vmatpush1.bf16.msra.mxu1 %v4346_v6  ;;  %v4429_v6 = vld [vmem:[#allocation5] ss:$8 sps:$4 sm:$0xff]  }
 0x1e3   :  { %1734 = vmatprep.subr.bf16.mxu1 %v4351_v9  ;;  %3285 = vmatpush1.bf16.msra.mxu0 %v4429_v6  ;;  %v4430_v9 = vld [vmem:[#allocation5 + $0x14] ss:$8 sps:$4 sm:$0xff]  }
 0x1e4   :  { %3286 = vmatprep.subr.bf16.mxu0 %v4430_v9  ;;  %v5043_v9 = vsub.s32 3, %v4900_v39 }
 0x1e6   :  { %1735 = vmatpush1.bf16.msra.mxu1 %v4349_v14  ;;  %v4432_v14 = vld [vmem:[#allocation5 + $0x10] ss:$8 sps:$4 sm:$0xff]  }
 0x1e7   :  { %1736 = vmatprep.subr.bf16.mxu1 %v4354_v10  ;;  %3287 = vmatpush1.bf16.msra.mxu0 %v4432_v14  ;;  %v4433_v10 = vld [vmem:[#allocation5 + $0x24] ss:$8 sps:$4 sm:$0xff]  }
 0x1e8   :  { %3288 = vmatprep.subr.bf16.mxu0 %v4433_v10 }
 0x1ea   :  { %1737 = vmatpush1.bf16.msra.mxu1 %v4352_v11  ;;  %v4435_v11 = vld [vmem:[#allocation5 + $0x20] ss:$8 sps:$4 sm:$0xff]  }
 0x1eb   :  { %1738 = vmatprep.subr.bf16.mxu1 %v4357_v16  ;;  %3289 = vmatpush1.bf16.msra.mxu0 %v4435_v11  ;;  %v4438_v16 = vld [vmem:[#allocation5 + $0x30] ss:$8 sps:$4 sm:$0xff]  }
 0x1ee   :  { %1739 = vmatpush1.bf16.msra.mxu1 %v4355_v17  ;;  %v4439_v17 = vld [vmem:[#allocation5 + $0x44] ss:$8 sps:$4 sm:$0xff]  }
 0x1ef   :  { %1740 = vmatprep.subr.bf16.mxu1 %v4360_v19  ;;  %v4441_v19 = vld [vmem:[#allocation5 + $0x40] ss:$8 sps:$4 sm:$0xff]  }
 0x1f2   :  { %1741 = vmatpush1.bf16.msra.mxu1 %v4358_v20  ;;  %v4442_v20 = vld [vmem:[#allocation5 + $0x54] ss:$8 sps:$4 sm:$0xff]  }
 0x1f3   :  { %1742 = vmatprep.subr.bf16.mxu1 %v4363_v21  ;;  %v4444_v21 = vld [vmem:[#allocation5 + $0x50] ss:$8 sps:$4 sm:$0xff]  }
 0x1f6   :  { %1743 = vmatpush1.bf16.msra.mxu1 %v4361_v22  ;;  %v4445_v22 = vld [vmem:[#allocation5 + $0x64] ss:$8 sps:$4 sm:$0xff]  }
 0x1f7   :  { %1744 = vmatprep.subr.bf16.mxu1 %v4366_v23  ;;  %v4447_v23 = vld [vmem:[#allocation5 + $0x60] ss:$8 sps:$4 sm:$0xff]  }
 0x1fa   :  { %1745 = vmatpush1.bf16.msra.mxu1 %v4364_v28  ;;  %v4448_v28 = vld [vmem:[#allocation5 + $0x74] ss:$8 sps:$4 sm:$0xff]  }
 0x1fb   :  { %1746 = vmatprep.subr.bf16.mxu1 %v4369_v29  ;;  %v4450_v29 = vld [vmem:[#allocation5 + $0x70] ss:$8 sps:$4 sm:$0xff]  }
 0x1fe   :  { %1747 = vmatpush1.bf16.msra.mxu1 %v4367_v30  ;;  %v4451_v30 = vld [vmem:[#allocation5 + $0x84] ss:$8 sps:$4 sm:$0xff]  }
 0x1ff   :  { %1748 = vmatprep.subr.bf16.mxu1 %v4372_v31  ;;  %v4453_v31 = vld [vmem:[#allocation5 + $0x80] ss:$8 sps:$4 sm:$0xff]  }
 0x202   :  { %1749 = vmatpush1.bf16.msra.mxu1 %v4370_v32  ;;  %v4454_v32 = vld [vmem:[#allocation5 + $0x94] ss:$8 sps:$4 sm:$0xff]  }
 0x203   :  { %1750 = vmatprep.subr.bf16.mxu1 %v4375_v33  ;;  %v4456_v33 = vld [vmem:[#allocation5 + $0x90] ss:$8 sps:$4 sm:$0xff]  }
 0x206   :  { %1751 = vmatpush1.bf16.msra.mxu1 %v4373_v34  ;;  %v4457_v34 = vld [vmem:[#allocation5 + $0xa4] ss:$8 sps:$4 sm:$0xff]  }
 0x207   :  { %1752 = vmatprep.subr.bf16.mxu1 %v4378_v35  ;;  %v4459_v35 = vld [vmem:[#allocation5 + $0xa0] ss:$8 sps:$4 sm:$0xff]  }
 0x20a   :  { %1753 = vmatpush1.bf16.msra.mxu1 %v4376_v36  ;;  %v4460_v36 = vld [vmem:[#allocation5 + $0xb4] ss:$8 sps:$4 sm:$0xff]  }
 0x20b   :  { %1765 = vmatprep.subr.bf16.mxu1 %v4381_v37  ;;  %v4462_v37 = vld [vmem:[#allocation5 + $0xb0] ss:$8 sps:$4 sm:$0xff]  }
 0x20d   :  { %1755 = vmatmul.mubr.bf16.vlgmr.msra.gmra.mrb[4].mxu1 %v4991_v15  ;;  %v4394_v15 = vld [vmem:[#allocation3 + $0x4a8] ss:$16 sps:$4 sm:$0xff]  }
 0x20e   :  { %1766 = vmatpush1.bf16.msra.mxu1 %v4379_v38  ;;  %1797 = vmatprep.mubr.bf16.mxu1 %v4984_v12  ;;  %v4397_v12 = vld [vmem:[#allocation3 + $0x4c8] ss:$16 sps:$4 sm:$0xff]   ;;  %v4463_v38 = vld [vmem:[#allocation5 + $0xc4] ss:$8 sps:$4 sm:$0xff]  }
 0x20f   :  { %1767 = vmatprep.subr.bf16.mxu1 %v4384_v41  ;;  %v4465_v41 = vld [vmem:[#allocation5 + $0xc0] ss:$8 sps:$4 sm:$0xff]  }
 0x212   :  { %1768 = vmatpush1.bf16.msra.mxu1 %v4382_v42  ;;  %v568_v42 = vld [vmem:[%s5208_s6] sm:$0xf] }
 0x213   :  { %1769 = vmatprep.subr.bf16.mxu1 %v4387_v44  ;;  %v4466_v44 = vld [vmem:[#allocation5 + $0xd4] ss:$8 sps:$4 sm:$0xff]  }
 0x216   :  { %1770 = vmatpush1.bf16.msra.mxu1 %v4385_v4  ;;  %v4468_v4 = vld [vmem:[#allocation5 + $0xd0] ss:$8 sps:$4 sm:$0xff]  }
 0x217   :  { %1771 = vmatprep.subr.bf16.mxu1 %v4390_v45  ;;  %v573_v45 = vrot.slane %v568_v42, %v4910_v43 }
 0x21a   :  { %1772 = vmatpush1.bf16.msra.mxu1 %v4388_v46  ;;  %v577_v46 = vrot.slane %v568_v42, %v4903_v40 }
 0x21b   :  { %1773 = vmatprep.subr.bf16.mxu1 %v4393_v48 }
 0x21e   :  { %1774 = vmatpush1.bf16.msra.mxu1 %v4391_v49  ;;  %v4469_v49 = vld [vmem:[#allocation5 + $0xe4] ss:$8 sps:$4 sm:$0xff]  }
 0x21f   :  { %1775 = vmatprep.subr.bf16.mxu1 %v4396_v50 }
 0x222   :  { %1776 = vmatpush1.bf16.msra.mxu1 %v4394_v15  ;;  %v4471_v15 = vld [vmem:[#allocation5 + $0xe0] ss:$8 sps:$4 sm:$0xff]  }
 0x223   :  { %1777 = vmatprep.subr.bf16.mxu1 %v4399_v51 }
 0x226   :  { %1778 = vmatpush1.bf16.msra.mxu1 %v4397_v12  ;;  %v4472_v12 = vld [vmem:[#allocation5 + $0xf4] ss:$8 sps:$4 sm:$0xff]  }
 0x227   :  { %1779 = vmatprep.subr.bf16.mxu1 %v4402_v52  ;;  %v4474_v52 = vld [vmem:[#allocation5 + $0xf0] ss:$8 sps:$4 sm:$0xff]  }
 0x22a   :  { %1780 = vmatpush1.bf16.msra.mxu1 %v4400_v53 }
 0x22b   :  { %1781 = vmatprep.subr.bf16.mxu1 %v4405_v54 }
 0x22e   :  { %1782 = vmatpush1.bf16.msra.mxu1 %v4403_v55 }
 0x22f   :  { %1783 = vmatprep.subr.bf16.mxu1 %v4408_v26 }
 0x232   :  { %1784 = vmatpush1.bf16.msra.mxu1 %v4406_v56 }
 0x233   :  { %1785 = vmatprep.subr.bf16.mxu1 %v4411_v27  ;;  %v4477_v27 = vld [vmem:[#allocation5 + $0x104] ss:$8 sps:$4 sm:$0xff]  }
 0x236   :  { %1786 = vmatpush1.bf16.msra.mxu1 %v4409_v57 }
 0x237   :  { %1787 = vmatprep.subr.bf16.mxu1 %v4414_v25 }
 0x23a   :  { %1788 = vmatpush1.bf16.msra.mxu1 %v4412_v58 }
 0x23b   :  { %1789 = vmatprep.subr.bf16.mxu1 %v4417_v59 }
 0x23e   :  { %1790 = vmatpush1.bf16.msra.mxu1 %v4415_v60 }
 0x23f   :  { %1791 = vmatprep.subr.bf16.mxu1 %v4420_v24 }
 0x242   :  { %1792 = vmatpush1.bf16.msra.mxu1 %v4418_v61 }
 0x243   :  { %1793 = vmatprep.subr.bf16.mxu1 %v4423_v62 }
 0x246   :  { %1794 = vmatpush1.bf16.msra.mxu1 %v4421_v63 }
 0x247   :  { %1795 = vmatprep.subr.bf16.mxu1 %v4426_v0 }
 0x24a   :  { %1796 = vmatpush1.bf16.msra.mxu1 %v4424_v1 }
 0x24d   :  { %1798 = vmatmul.mubr.bf16.vlgmr.msra.gmra.mrb[4].mxu1 %v4986_v13  ;;  %v4436_v13 = vld [vmem:[#allocation5 + $0x34] ss:$8 sps:$4 sm:$0xff]  }
 0x24e   :  { %3290 = vmatprep.subr.bf16.mxu0 %v4436_v13  ;;  %v581_v13 = vrot.slane %v568_v42, %v4915_v47 }
 0x24f   :  { %3291 = vmatpush1.bf16.msra.mxu0 %v4438_v16 }
 0x250   :  { %3292 = vmatprep.subr.bf16.mxu0 %v4439_v17 }
 0x253   :  { %3293 = vmatpush1.bf16.msra.mxu0 %v4441_v19  ;;  %v585_v19 = vrot.slane %v568_v42, %v5043_v9 }
 0x254   :  { %3294 = vmatprep.subr.bf16.mxu0 %v4442_v20 }
 0x257   :  { %3295 = vmatpush1.bf16.msra.mxu0 %v4444_v21 }
 0x258   :  { %3296 = vmatprep.subr.bf16.mxu0 %v4445_v22 }
 0x25b   :  { %3297 = vmatpush1.bf16.msra.mxu0 %v4447_v23 }
 0x25c   :  { %3298 = vmatprep.subr.bf16.mxu0 %v4448_v28 }
 0x25f   :  { %3299 = vmatpush1.bf16.msra.mxu0 %v4450_v29 }
 0x260   :  { %v5004_v2 = vpop.f32.mrb[0].mxu1  ;;  %3300 = vmatprep.subr.bf16.mxu0 %v4451_v30 }
 0x261   :  { %v5006_v3 = vpop.f32.mrb[1].mxu1  ;;  %v5023_v53 = vadd.f32 %v5004_v2, %v573_v45 }
 0x262   :  { %v1674_v5 = vpop.f32.mrb[2].mxu1  ;;  %v5028_v55 = vadd.f32 %v5006_v3, %v577_v46 }
 0x263   :  { %v5008_v7 = vpop.f32.mrb[3].mxu1  ;;  %3301 = vmatpush1.bf16.msra.mxu0 %v4453_v31  ;;  %v5015_v48 = vadd.f32 %v1674_v5, %v573_v45 }
 0x264   :  { %3302 = vmatprep.subr.bf16.mxu0 %v4454_v32  ;;  %v5018_v50 = vadd.f32 %v5008_v7, %v577_v46 }
 0x265   :  { %v1811_v51 = vsel %vm1810_vm2, %v5015_v48, 0.0 }
 0x266   :  { %v1819_v54 = vsel %vm1810_vm2, %v5018_v50, 0.0  ;;  %v1812_v26 = vadd.f32 %v5023_v53, %v1811_v51 }
 0x267   :  { %3303 = vmatpush1.bf16.msra.mxu0 %v4456_v33  ;;  %v1820_v56 = vadd.f32 %v5028_v55, %v1819_v54 }
 0x268   :  { %3304 = vmatprep.subr.bf16.mxu0 %v4457_v34  ;;  %v1813_v57 = vrot.slane %v1812_v26, 4 }
 0x269   :  { %v1821_v25 = vrot.slane %v1820_v56, 4 }
 0x26a   :  { %v1814_v58 = vadd.f32 %v1813_v57, %v1812_v26 }
 0x26b   :  { %3305 = vmatpush1.bf16.msra.mxu0 %v4459_v35  ;;  %v1822_v59 = vadd.f32 %v1821_v25, %v1820_v56 }
 0x26c   :  { %3306 = vmatprep.subr.bf16.mxu0 %v4460_v36  ;;  %v1815_v60 = vrot.slane %v1814_v58, 2 }
 0x26d   :  { %v1823_v24 = vrot.slane %v1822_v59, 2 }
 0x26e   :  { %v1816_v61 = vadd.f32 %v1815_v60, %v1814_v58 }
 0x26f   :  { %3307 = vmatpush1.bf16.msra.mxu0 %v4462_v37  ;;  %v1824_v62 = vadd.f32 %v1823_v24, %v1822_v59 }
 0x270   :  { %3308 = vmatprep.subr.bf16.mxu0 %v4463_v38  ;;  %v1817_v63 = vrot.slane %v1816_v61, 1 }
 0x271   :  { %v1825_v0 = vrot.slane %v1824_v62, 1 }
 0x272   :  { %v1818_v1 = vadd.f32 %v1817_v63, %v1816_v61 }
 0x273   :  { %3309 = vmatpush1.bf16.msra.mxu0 %v4465_v41  ;;  %v1826_v2 = vadd.f32 %v1825_v0, %v1824_v62 }
 0x274   :  { %3310 = vmatprep.subr.bf16.mxu0 %v4466_v44  ;;  %v5032_v3 = vmul.f32 0.1, %v1818_v1 }
 0x275   :  { %v5034_v5 = vmul.f32 0.1, %v1826_v2 }
 0x276   :  { %v1852_v7 = vsub.f32 %v5015_v48, %v5032_v3  ;;  %v1848_v6 = vsub.f32 %v5023_v53, %v5032_v3 }
 0x277   :  { %3311 = vmatpush1.bf16.msra.mxu0 %v4468_v4  ;;  %v1853_v8 = vsub.f32 %v5018_v50, %v5034_v5  ;;  %v1849_v10 = vsub.f32 %v5028_v55, %v5034_v5 }
 0x278   :  { %3312 = vmatprep.subr.bf16.mxu0 %v4469_v49  ;;  %v1860_v14 = vmul.f32 %v1852_v7, %v1852_v7  ;;  %v1856_v17 = vmul.f32 %v1848_v6, %v1848_v6 }
 0x279   :  { %v1861_v11 = vmul.f32 %v1853_v8, %v1853_v8  ;;  %v1857_v22 = vmul.f32 %v1849_v10, %v1849_v10 }
 0x27a   :  { %v1864_v21 = vsel %vm1810_vm2, %v1860_v14, 0.0 }
 0x27b   :  { %3313 = vmatpush1.bf16.msra.mxu0 %v4471_v15  ;;  %v1872_v28 = vsel %vm1810_vm2, %v1861_v11, 0.0  ;;  %v1865_v32 = vadd.f32 %v1864_v21, %v1856_v17 }
 0x27c   :  { %3314 = vmatprep.subr.bf16.mxu0 %v4472_v12  ;;  %v1873_v35 = vadd.f32 %v1872_v28, %v1857_v22 }
 0x27d   :  { %v1866_v42 = vrot.slane %v1865_v32, 4 }
 0x27e   :  { %v1874_v4 = vrot.slane %v1873_v35, 4 }
 0x27f   :  { %3315 = vmatpush1.bf16.msra.mxu0 %v4474_v52  ;;  %v1867_v15 = vadd.f32 %v1866_v42, %v1865_v32 }
 0x280   :  { %3325 = vmatprep.subr.bf16.mxu0 %v4477_v27  ;;  %v1875_v12 = vadd.f32 %v1874_v4, %v1873_v35 }
 0x281   :  { %v1868_v56 = vrot.slane %v1867_v15, 2 }
 0x282   :  { %v1876_v57 = vrot.slane %v1875_v12, 2 }
 0x283   :  { %v1869_v60 = vadd.f32 %v1868_v56, %v1867_v15 }
 0x284   :  { %v1877_v61 = vadd.f32 %v1876_v57, %v1875_v12 }
 0x285   :  { %v1870_v8 = vrot.slane %v1869_v60, 1 }
 0x286   :  { %v1878_v10 = vrot.slane %v1877_v61, 1 }
 0x288   :  { %v1879_v21 = vadd.f32 %v1878_v10, %v1877_v61 }
 0x320   :  { %v1799_v16 = vpop.f32.mrb[4].mxu1 }
 0x321   :  { %v1801_v20 = vpop.f32.mrb[5].mxu1  ;;  %v5053_v30 = vadd.f32 %v1799_v16, %v581_v13 }
 0x322   :  { %v1803_v23 = vpop.f32.mrb[6].mxu1  ;;  %v5057_v33 = vadd.f32 %v1801_v20, %v585_v19 }
 0x323   :  { %v5051_v39 = vadd.f32 %v1803_v23, %v581_v13  ;;  %v1805_v29 = vpop.f32.mrb[7].mxu1 }
 0x324   :  { %v5055_v31 = vadd.f32 %v1805_v29, %v585_v19  ;;  %v1871_v19 = vadd.f32 %v1870_v8, %v1869_v60  ;;  %v1808_v60 = vld [vmem:[%s5209_s7] sm:$0xf] }
 0x325   :  { %v1827_v34 = vsel %vm1810_vm2, %v5051_v39, 0.0 }
 0x326   :  { %v1828_v36 = vadd.f32 %v5053_v30, %v1827_v34  ;;  %v1835_v37 = vsel %vm1810_vm2, %v5055_v31, 0.0  ;;  %v1896_v29 = vmul.f32 0.1, %v1871_v19  ;;  %v1897_v34 = vmul.f32 0.1, %v1879_v21 }
 0x327   :  { %v1836_v38 = vadd.f32 %v5057_v33, %v1835_v37  ;;  %v1809_v21 = vld [vmem:[%s5210_s8] sm:$0xf] }
 0x328   :  { %v1829_v41 = vrot.slane %v1828_v36, 4  ;;  %v1901_v42 = vadd.f32 1e-05, %v1897_v34 }
 0x329   :  { %v1837_v44 = vrot.slane %v1836_v38, 4 }
 0x32a   :  { %v1830_v45 = vadd.f32 %v1829_v41, %v1828_v36 }
 0x32b   :  { %v1838_v46 = vadd.f32 %v1837_v44, %v1836_v38  ;;  %v1900_v38 = vadd.f32 1e-05, %v1896_v29 }
 0x32c   :  { %v1831_v49 = vrot.slane %v1830_v45, 2 }
 0x32d   :  { %v1839_v51 = vrot.slane %v1838_v46, 2  ;;  %4720 = vrsqrt.f32 %v1900_v38 }
 0x32e   :  { %v1832_v52 = vadd.f32 %v1831_v49, %v1830_v45  ;;  %4722 = vrsqrt.f32 %v1901_v42 }
 0x32f   :  { %v1840_v54 = vadd.f32 %v1839_v51, %v1838_v46 }
 0x330   :  { %v1833_v26 = vrot.slane %v1832_v52, 1 }
 0x331   :  { %v1841_v27 = vrot.slane %v1840_v54, 1 }
 0x332   :  { %v1834_v25 = vadd.f32 %v1833_v26, %v1832_v52 }
 0x333   :  { %v1842_v58 = vadd.f32 %v1841_v27, %v1840_v54 }
 0x334   :  { %v1846_v59 = vmul.f32 0.1, %v1834_v25 }
 0x335   :  { %v1847_v24 = vmul.f32 0.1, %v1842_v58 }
 0x336   :  { %v1850_v62 = vsub.f32 %v5053_v30, %v1846_v59  ;;  %v1854_v63 = vsub.f32 %v5051_v39, %v1846_v59 }
 0x337   :  { %v1851_v0 = vsub.f32 %v5057_v33, %v1847_v24  ;;  %v1855_v1 = vsub.f32 %v5055_v31, %v1847_v24  ;;  %v4721_v12 = vpop.eup %4720 }
 0x338   :  { %v1858_v2 = vmul.f32 %v1850_v62, %v1850_v62  ;;  %v1862_v7 = vmul.f32 %v1854_v63, %v1854_v63  ;;  %v4723_v52 = vpop.eup %4722 }
 0x339   :  { %v1859_v6 = vmul.f32 %v1851_v0, %v1851_v0  ;;  %v1863_v14 = vmul.f32 %v1855_v1, %v1855_v1  ;;  %v1912_v26 = vcombine.low %v4721_v12, %v4723_v52 }
 0x33a   :  { %v1880_v11 = vsel %vm1810_vm2, %v1862_v7, 0.0 }
 0x33b   :  { %v1881_v13 = vadd.f32 %v1880_v11, %v1858_v2  ;;  %v1888_v16 = vsel %vm1810_vm2, %v1863_v14, 0.0  ;;  %v1920_v57 = vrot.slane %v1912_v26, %v4952_v18 }
 0x33c   :  { %v1889_v17 = vadd.f32 %v1888_v16, %v1859_v6 }
 0x33d   :  { %v1882_v20 = vrot.slane %v1881_v13, 4 }
 0x33e   :  { %v1890_v22 = vrot.slane %v1889_v17, 4 }
 0x33f   :  { %v1883_v23 = vadd.f32 %v1882_v20, %v1881_v13 }
 0x340   :  { %v1891_v28 = vadd.f32 %v1890_v22, %v1889_v17 }
 0x341   :  { %v1884_v32 = vrot.slane %v1883_v23, 2 }
 0x342   :  { %v1892_v35 = vrot.slane %v1891_v28, 2 }
 0x343   :  { %v1885_v36 = vadd.f32 %v1884_v32, %v1883_v23 }
 0x344   :  { %v1893_v37 = vadd.f32 %v1892_v35, %v1891_v28 }
 0x345   :  { %v1886_v41 = vrot.slane %v1885_v36, 1 }
 0x346   :  { %v1894_v44 = vrot.slane %v1893_v37, 1 }
 0x347   :  { %v1887_v4 = vadd.f32 %v1886_v41, %v1885_v36 }
 0x348   :  { %v1895_v45 = vadd.f32 %v1894_v44, %v1893_v37 }
 0x349   :  { %v1898_v46 = vmul.f32 0.1, %v1887_v4 }
 0x34a   :  { %v1899_v49 = vmul.f32 0.1, %v1895_v45 }
 0x34b   :  { %v1902_v15 = vadd.f32 1e-05, %v1898_v46 }
 0x34c   :  { %v1903_v51 = vadd.f32 1e-05, %v1899_v49 }
 0x34d   :  { %4724 = vrsqrt.f32 %v1902_v15 }
 0x34e   :  { %4726 = vrsqrt.f32 %v1903_v51 }
 0x357   :  { %v4725_v54 = vpop.eup %4724 }
 0x358   :  { %v4727_v56 = vpop.eup %4726 }
 0x359   :  { %v1913_v27 = vcombine.low %v4725_v54, %v4727_v56 }
 0x35b   :  { %v1927_v25 = vrot.slane %v1913_v27, %v4952_v18 }
 0x35d   :  { %v1928_v58 = vcombine.low %v1920_v57, %v1927_v25  ;;  %v4475_v57 = vld [vmem:[#allocation5 + $0x100] ss:$8 sps:$4 sm:$0xff]  }
 0x35f   :  { %v1935_v61 = vrot.slane %v1928_v58, %v4952_v18 }
 0x361   :  { %v1937_v62 = vmul.f32 %v1935_v61, %v1808_v60 }
 0x363   :  { %v1942_v63 = vrot.slane %v1937_v62, %v4910_v43  ;;  %v1946_v0 = vrot.slane %v1937_v62, %v4903_v40  ;;  %v1950_v1 = vrot.slane %v1937_v62, %v4915_v47  ;;  %v1954_v2 = vrot.slane %v1937_v62, %v5043_v9 }
 0x365   :  { %v1959_v7 = vmul.f32 %v1942_v63, %v5032_v3  ;;  %v1960_v8 = vmul.f32 %v1946_v0, %v5034_v5  ;;  %v1961_v6 = vmul.f32 %v1950_v1, %v1846_v59  ;;  %v1962_v14 = vmul.f32 %v1954_v2, %v1847_v24 }
 0x366   :  { %v2000_v10 = vmul.f32 %v5055_v31, %v1954_v2  ;;  %v1996_v16 = vmul.f32 %v5057_v33, %v1954_v2  ;;  %v1994_v59 = vmul.f32 %v5028_v55, %v1946_v0  ;;  %v1998_v31 = vmul.f32 %v5018_v50, %v1946_v0 }
 0x367   :  { %v1967_v11 = vcombine.low %v1959_v7, %v1960_v8  ;;  %v1968_v13 = vcombine.low %v1961_v6, %v1962_v14  ;;  %v1993_v24 = vmul.f32 %v5023_v53, %v1942_v63  ;;  %v1997_v29 = vmul.f32 %v5015_v48, %v1942_v63  ;;  %v4480_v63 = vld [vmem:[#allocation5 + $0x114] ss:$8 sps:$4 sm:$0xff]  }
 0x368   :  { %v1995_v32 = vmul.f32 %v5053_v30, %v1950_v1  ;;  %v1999_v34 = vmul.f32 %v5051_v39, %v1950_v1 }
 0x369   :  { %v1975_v17 = vrot.slane %v1967_v11, %v4952_v18  ;;  %v1982_v19 = vrot.slane %v1968_v13, %v4952_v18  ;;  %v4478_v13 = vld [vmem:[#allocation5 + $0x110] ss:$8 sps:$4 sm:$0xff]  }
 0x36b   :  { %v1983_v20 = vcombine.low %v1975_v17, %v1982_v19 }
 0x36d   :  { %v1990_v3 = vrot.slane %v1983_v20, %v4952_v18 }
 0x36f   :  { %v1992_v5 = vsub.f32 %v1809_v21, %v1990_v3  ;;  %v4483_v21 = vld [vmem:[#allocation5 + $0x124] ss:$8 sps:$4 sm:$0xff]  }
 0x371   :  { %v2017_v33 = vrot.slane %v1992_v5, %v5043_v9  ;;  %v2009_v22 = vrot.slane %v1992_v5, %v4903_v40  ;;  %v2005_v23 = vrot.slane %v1992_v5, %v4910_v43  ;;  %v2013_v28 = vrot.slane %v1992_v5, %v4915_v47 }
 0x373   :  { %v2029_v35 = vadd.f32 %v2017_v33, %v2000_v10  ;;  %v2023_v55 = vadd.f32 %v2009_v22, %v1994_v59  ;;  %v2027_v36 = vadd.f32 %v2009_v22, %v1998_v31  ;;  %v2022_v50 = vadd.f32 %v2005_v23, %v1993_v24 }
 0x374   :  { %v2026_v37 = vadd.f32 %v2005_v23, %v1997_v29  ;;  %v2025_v53 = vadd.f32 %v2017_v33, %v1996_v16  ;;  %v2024_v38 = vadd.f32 %v2013_v28, %v1995_v32  ;;  %v2028_v9 = vadd.f32 %v2013_v28, %v1999_v34  ;;  %v4481_v32 = vld [vmem:[#allocation5 + $0x120] ss:$8 sps:$4 sm:$0xff]  }
 0x375   :  { %v2037_v41 = vmax.f32 %v2029_v35, 0.0  ;;  %v2031_v42 = vmax.f32 %v2023_v55, 0.0  ;;  %v2035_v44 = vmax.f32 %v2027_v36, 0.0  ;;  %v2030_v4 = vmax.f32 %v2022_v50, 0.0  ;;  %v4486_v55 = vld [vmem:[#allocation5 + $0x134] ss:$8 sps:$4 sm:$0xff]  }
 0x376   :  { %v2034_v47 = vmax.f32 %v2026_v37, 0.0  ;;  %v2033_v45 = vmax.f32 %v2025_v53, 0.0  ;;  %v5101_v46 = vmax.f32 %v2024_v38, 0.0  ;;  %v2036_v39 = vmax.f32 %v2028_v9, 0.0  ;;  %v4484_v38 = vld [vmem:[#allocation5 + $0x130] ss:$8 sps:$4 sm:$0xff]  }
 0x377   :  { %v2051_v48 = vrot.slane %v2031_v42, 2  ;;  %v2065_v30 = vrot.slane %v2035_v44, 1  ;;  %v2069_v49 = vrot.slane %v2037_v41, 1  ;;  %v2073_v15 = vrot.slane %v2035_v44, 2  ;;  %v4489_v9 = vld [vmem:[#allocation5 + $0x144] ss:$8 sps:$4 sm:$0xff]  }
 0x378   :  { %v2050_v51 = vrot.slane %v2030_v4, 2  ;;  %v2063_v12 = vrot.slane %v2034_v47, 1  ;;  %v2071_v54 = vrot.slane %v2034_v47, 2  ;;  %v2053_v26 = vrot.slane %v2033_v45, 2  ;;  %v4492_v44 = vld [vmem:[#allocation5 + $0x154] ss:$8 sps:$4 sm:$0xff]  }
 0x379   :  { %v2097_v52 = vsel %vm2095_vm3, %v2031_v42, %v2051_v48  ;;  %v2043_v56 = vrot.slane %v2031_v42, 1  ;;  %v2042_v58 = vrot.slane %v2030_v4, 1  ;;  %v2045_v60 = vrot.slane %v2033_v45, 1  ;;  %v4487_v42 = vld [vmem:[#allocation5 + $0x140] ss:$8 sps:$4 sm:$0xff]  }
 0x37a   :  { %v2109_v27 = vpack.c.bf16 %v2097_v52, %v2097_v52  ;;  %v2096_v25 = vsel %vm2095_vm3, %v2030_v4, %v2050_v51  ;;  %v2099_v62 = vsel %vm2095_vm3, %v2033_v45, %v2053_v26  ;;  %v2077_v1 = vrot.slane %v2037_v41, 2  ;;  %v4490_v4 = vld [vmem:[#allocation5 + $0x150] ss:$8 sps:$4 sm:$0xff]   ;;  %v4495_v47 = vld [vmem:[#allocation5 + $0x164] ss:$8 sps:$4 sm:$0xff]  }
 0x37b   :  { %v2108_v61 = vpack.c.bf16 %v2096_v25, %v2096_v25  ;;  %v2066_v0 = vsel %vm2062_vm4, %v2043_v56, %v2065_v30  ;;  %v2111_v2 = vpack.c.bf16 %v2099_v62, %v2099_v62  ;;  %v2064_v8 = vsel %vm2062_vm4, %v2042_v58, %v2063_v12  ;;  %v4493_v45 = vld [vmem:[#allocation5 + $0x160] ss:$8 sps:$4 sm:$0xff]   ;;  %v4496_v30 = vld [vmem:[#allocation5 + $0x170] ss:$8 sps:$4 sm:$0xff]   ;;  %v4507_v12 = vld [vmem:[#allocation5 + $0x1a4] ss:$8 sps:$4 sm:$0xff]  }
 0x37c   :  { %3316 = vmatprep.mubr.bf16.mxu0 %v2109_v27  ;;  %v2080_v7 = vrot.slane %v2066_v0, 2  ;;  %v2079_v6 = vrot.slane %v2064_v8, 2  ;;  %v2070_v14 = vsel %vm2062_vm4, %v2045_v60, %v2069_v49  ;;  %v2044_v10 = vrot.slane %v5101_v46, 1  ;;  %v4499_v49 = vld [vmem:[#allocation5 + $0x180] ss:$8 sps:$4 sm:$0xff]  }
 0x37d   :  { %3317 = vmatmul.mubr.bf16.vlgmr.msra.gmra.mrb[0].mxu0 %v2108_v61  ;;  %v2074_v11 = vsel %vm201_vm0, %v2051_v48, %v2073_v15  ;;  %v2082_v17 = vrot.slane %v2070_v14, 2  ;;  %v2067_v19 = vrot.slane %v2036_v39, 1  ;;  %v2072_v20 = vsel %vm201_vm0, %v2050_v51, %v2071_v54  ;;  %v4504_v15 = vld [vmem:[#allocation5 + $0x194] ss:$8 sps:$4 sm:$0xff]   ;;  %v4505_v52 = vld [vmem:[#allocation5 + $0x1a0] ss:$8 sps:$4 sm:$0xff]  }
 0x37e   :  { %3326 = vmatpush1.bf16.msra.mxu0 %v4475_v57  ;;  %3357 = vmatprep.mubr.bf16.mxu0 %v2111_v2  ;;  %v5112_v16 = vsel %vm2095_vm3, %v2043_v56, %v2080_v7  ;;  %v5116_v3 = vsel %vm2095_vm3, %v2042_v58, %v2079_v6  ;;  %v2084_v5 = vrot.slane %v2074_v11, 2  ;;  %v2083_v59 = vrot.slane %v2072_v20, 2  ;;  %v4510_v54 = vld [vmem:[#allocation5 + $0x1b4] ss:$8 sps:$4 sm:$0xff]   ;;  %v4513_v56 = vld [vmem:[#allocation5 + $0x1c4] ss:$8 sps:$4 sm:$0xff]  }
 0x37f   :  { %3327 = vmatprep.subr.bf16.mxu0 %v4480_v63  ;;  %v5119_v31 = vrot.slane %v5101_v46, 2  ;;  %v5122_v24 = vsel %vm2095_vm3, %v2045_v60, %v2082_v17  ;;  %v2068_v33 = vsel %vm2062_vm4, %v2044_v10, %v2067_v19  ;;  %v2078_v22 = vsel %vm201_vm0, %v2053_v26, %v2077_v1  ;;  %v4511_v27 = vld [vmem:[#allocation5 + $0x1c0] ss:$8 sps:$4 sm:$0xff]   ;;  %v4516_v57 = vld [vmem:[#allocation5 + $0x1d4] ss:$8 sps:$4 sm:$0xff]  }
 0x380   :  { %v2081_v23 = vrot.slane %v2068_v33, 2  ;;  %v5127_v28 = vsel %vm2095_vm3, %v2051_v48, %v2084_v5  ;;  %v5130_v29 = vsel %vm2095_vm3, %v2050_v51, %v2083_v59  ;;  %v2086_v34 = vrot.slane %v2078_v22, 2  ;;  %v4498_v48 = vld [vmem:[#allocation5 + $0x174] ss:$8 sps:$4 sm:$0xff]   ;;  %v4502_v51 = vld [vmem:[#allocation5 + $0x190] ss:$8 sps:$4 sm:$0xff]  }
 0x381   :  { %v2075_v35 = vrot.slane %v2036_v39, 2  ;;  %v4501_v39 = vld [vmem:[#allocation5 + $0x184] ss:$8 sps:$4 sm:$0xff]   ;;  %v4514_v25 = vld [vmem:[#allocation5 + $0x1d0] ss:$8 sps:$4 sm:$0xff]   ;;  %v2098_v0 = vsel %vm2095_vm3, %v5101_v46, %v5119_v31  ;;  %v2113_v8 = vpack.c.bf16 %v5112_v16, %v5112_v16 }
 0x382   :  { %3328 = vmatpush1.bf16.msra.mxu0 %v4478_v13  ;;  %v5133_v36 = vsel %vm2095_vm3, %v2044_v10, %v2081_v23  ;;  %v5136_v50 = vsel %vm2095_vm3, %v2053_v26, %v2086_v34  ;;  %v4508_v26 = vld [vmem:[#allocation5 + $0x1b0] ss:$8 sps:$4 sm:$0xff]   ;;  %v4519_v58 = vld [vmem:[#allocation5 + $0x1e4] ss:$8 sps:$4 sm:$0xff]   ;;  %v4517_v60 = vld [vmem:[#allocation5 + $0x1e0] ss:$8 sps:$4 sm:$0xff]   ;;  %v2110_v2 = vpack.c.bf16 %v2098_v0, %v2098_v0 }
 0x383   :  { %3329 = vmatprep.subr.bf16.mxu0 %v4483_v21  ;;  %v2076_v37 = vsel %vm201_vm0, %v5119_v31, %v2075_v35  ;;  %v4522_v61 = vld [vmem:[#allocation5 + $0x1f4] ss:$8 sps:$4 sm:$0xff]   ;;  %v4520_v62 = vld [vmem:[#allocation5 + $0x1f0] ss:$8 sps:$4 sm:$0xff]   ;;  %v4525_v63 = vld [vmem:[#allocation5 + $0x204] ss:$8 sps:$4 sm:$0xff]  }
 0x384   :  { %v2085_v53 = vrot.slane %v2076_v37, 2  ;;  %v4523_v1 = vld [vmem:[#allocation5 + $0x200] ss:$8 sps:$4 sm:$0xff]   ;;  %v4528_v7 = vld [vmem:[#allocation5 + $0x214] ss:$8 sps:$4 sm:$0xff]  }
 0x385   :  { %v4526_v6 = vld [vmem:[#allocation5 + $0x210] ss:$8 sps:$4 sm:$0xff]   ;;  %v4531_v14 = vld [vmem:[#allocation5 + $0x224] ss:$8 sps:$4 sm:$0xff]   ;;  %v4529_v10 = vld [vmem:[#allocation5 + $0x220] ss:$8 sps:$4 sm:$0xff]  }
 0x386   :  { %3330 = vmatpush1.bf16.msra.mxu0 %v4481_v32  ;;  %v5142_v41 = vsel %vm2095_vm3, %v5119_v31, %v2085_v53  ;;  %v4534_v11 = vld [vmem:[#allocation5 + $0x234] ss:$8 sps:$4 sm:$0xff]   ;;  %v4532_v46 = vld [vmem:[#allocation5 + $0x230] ss:$8 sps:$4 sm:$0xff]   ;;  %v4537_v13 = vld [vmem:[#allocation5 + $0x244] ss:$8 sps:$4 sm:$0xff]  }
 0x387   :  { %3331 = vmatprep.subr.bf16.mxu0 %v4486_v55  ;;  %v4535_v17 = vld [vmem:[#allocation5 + $0x240] ss:$8 sps:$4 sm:$0xff]   ;;  %v4540_v19 = vld [vmem:[#allocation5 + $0x254] ss:$8 sps:$4 sm:$0xff]   ;;  %v4538_v16 = vld [vmem:[#allocation5 + $0x250] ss:$8 sps:$4 sm:$0xff]  }
 0x388   :  { %v4543_v20 = vld [vmem:[#allocation5 + $0x264] ss:$8 sps:$4 sm:$0xff]   ;;  %v4541_v21 = vld [vmem:[#allocation5 + $0x260] ss:$8 sps:$4 sm:$0xff]   ;;  %v4546_v5 = vld [vmem:[#allocation5 + $0x274] ss:$8 sps:$4 sm:$0xff]  }
 0x389   :  { %v4544_v59 = vld [vmem:[#allocation5 + $0x270] ss:$8 sps:$4 sm:$0xff]   ;;  %v4549_v31 = vld [vmem:[#allocation5 + $0x284] ss:$8 sps:$4 sm:$0xff]   ;;  %v4547_v33 = vld [vmem:[#allocation5 + $0x280] ss:$8 sps:$4 sm:$0xff]  }
 0x38a   :  { %3332 = vmatpush1.bf16.msra.mxu0 %v4484_v38  ;;  %v4552_v22 = vld [vmem:[#allocation5 + $0x294] ss:$8 sps:$4 sm:$0xff]   ;;  %v4550_v23 = vld [vmem:[#allocation5 + $0x290] ss:$8 sps:$4 sm:$0xff]   ;;  %v4555_v32 = vld [vmem:[#allocation5 + $0x2a4] ss:$8 sps:$4 sm:$0xff]  }
 0x38b   :  { %3333 = vmatprep.subr.bf16.mxu0 %v4489_v9  ;;  %v4553_v34 = vld [vmem:[#allocation5 + $0x2a0] ss:$8 sps:$4 sm:$0xff]   ;;  %v4558_v35 = vld [vmem:[#allocation5 + $0x2b4] ss:$8 sps:$4 sm:$0xff]   ;;  %v4556_v55 = vld [vmem:[#allocation5 + $0x2b0] ss:$8 sps:$4 sm:$0xff]  }
 0x38c   :  { %v4561_v37 = vld [vmem:[#allocation5 + $0x2c4] ss:$8 sps:$4 sm:$0xff]   ;;  %v4559_v53 = vld [vmem:[#allocation5 + $0x2c0] ss:$8 sps:$4 sm:$0xff]   ;;  %v4564_v38 = vld [vmem:[#allocation5 + $0x2d4] ss:$8 sps:$4 sm:$0xff]  }
 0x38d   :  { %v4562_v9 = vld [vmem:[#allocation5 + $0x2d0] ss:$8 sps:$4 sm:$0xff]   ;;  %v4603_v0 = vld [vmem:[#allocation5 + $0x3a4] ss:$8 sps:$4 sm:$0xff]  }
 0x38e   :  { %3334 = vmatpush1.bf16.msra.mxu0 %v4487_v42  ;;  %v4567_v42 = vld [vmem:[#allocation5 + $0x2e4] ss:$8 sps:$4 sm:$0xff]  }
 0x38f   :  { %3335 = vmatprep.subr.bf16.mxu0 %v4492_v44  ;;  %v4565_v44 = vld [vmem:[#allocation5 + $0x2e0] ss:$8 sps:$4 sm:$0xff]  }
 0x392   :  { %3336 = vmatpush1.bf16.msra.mxu0 %v4490_v4  ;;  %v4570_v4 = vld [vmem:[#allocation5 + $0x2f4] ss:$8 sps:$4 sm:$0xff]  }
 0x393   :  { %3337 = vmatprep.subr.bf16.mxu0 %v4495_v47  ;;  %v4568_v47 = vld [vmem:[#allocation5 + $0x2f0] ss:$8 sps:$4 sm:$0xff]  }
 0x396   :  { %3338 = vmatpush1.bf16.msra.mxu0 %v4493_v45  ;;  %v4573_v45 = vld [vmem:[#allocation5 + $0x304] ss:$8 sps:$4 sm:$0xff]  }
 0x397   :  { %3339 = vmatprep.subr.bf16.mxu0 %v4498_v48  ;;  %v4571_v48 = vld [vmem:[#allocation5 + $0x300] ss:$8 sps:$4 sm:$0xff]  }
 0x39a   :  { %3340 = vmatpush1.bf16.msra.mxu0 %v4496_v30  ;;  %v2112_v30 = vpack.c.bf16 %v5116_v3, %v5116_v3  ;;  %v4583_v3 = vld [vmem:[#allocation5 + $0x340] ss:$8 sps:$4 sm:$0xff]  }
 0x39b   :  { %3341 = vmatprep.subr.bf16.mxu0 %v4501_v39  ;;  %v4576_v39 = vld [vmem:[#allocation5 + $0x314] ss:$8 sps:$4 sm:$0xff]  }
 0x39e   :  { %3342 = vmatpush1.bf16.msra.mxu0 %v4499_v49  ;;  %v2115_v49 = vpack.c.bf16 %v5122_v24, %v5122_v24  ;;  %v4586_v24 = vld [vmem:[#allocation5 + $0x350] ss:$8 sps:$4 sm:$0xff]  }
 0x39f   :  { %3343 = vmatprep.subr.bf16.mxu0 %v4504_v15  ;;  %v4574_v15 = vld [vmem:[#allocation5 + $0x310] ss:$8 sps:$4 sm:$0xff]  }
 0x3a2   :  { %3344 = vmatpush1.bf16.msra.mxu0 %v4502_v51  ;;  %v4579_v51 = vld [vmem:[#allocation5 + $0x324] ss:$8 sps:$4 sm:$0xff]  }
 0x3a3   :  { %3345 = vmatprep.subr.bf16.mxu0 %v4507_v12  ;;  %v4577_v12 = vld [vmem:[#allocation5 + $0x320] ss:$8 sps:$4 sm:$0xff]  }
 0x3a6   :  { %3346 = vmatpush1.bf16.msra.mxu0 %v4505_v52  ;;  %v4582_v52 = vld [vmem:[#allocation5 + $0x334] ss:$8 sps:$4 sm:$0xff]  }
 0x3a7   :  { %3347 = vmatprep.subr.bf16.mxu0 %v4510_v54  ;;  %v4580_v54 = vld [vmem:[#allocation5 + $0x330] ss:$8 sps:$4 sm:$0xff]  }
 0x3aa   :  { %3348 = vmatpush1.bf16.msra.mxu0 %v4508_v26  ;;  %v4585_v26 = vld [vmem:[#allocation5 + $0x344] ss:$8 sps:$4 sm:$0xff]  }
 0x3ab   :  { %3349 = vmatprep.subr.bf16.mxu0 %v4513_v56  ;;  %v4588_v56 = vld [vmem:[#allocation5 + $0x354] ss:$8 sps:$4 sm:$0xff]  }
 0x3ae   :  { %3350 = vmatpush1.bf16.msra.mxu0 %v4511_v27  ;;  %v4591_v27 = vld [vmem:[#allocation5 + $0x364] ss:$8 sps:$4 sm:$0xff]  }
 0x3af   :  { %3351 = vmatprep.subr.bf16.mxu0 %v4516_v57  ;;  %v4589_v57 = vld [vmem:[#allocation5 + $0x360] ss:$8 sps:$4 sm:$0xff]  }
 0x3b2   :  { %3352 = vmatpush1.bf16.msra.mxu0 %v4514_v25  ;;  %v4594_v25 = vld [vmem:[#allocation5 + $0x374] ss:$8 sps:$4 sm:$0xff]  }
 0x3b3   :  { %3353 = vmatprep.subr.bf16.mxu0 %v4519_v58  ;;  %v4592_v58 = vld [vmem:[#allocation5 + $0x370] ss:$8 sps:$4 sm:$0xff]  }
 0x3b6   :  { %3354 = vmatpush1.bf16.msra.mxu0 %v4517_v60  ;;  %v4597_v60 = vld [vmem:[#allocation5 + $0x384] ss:$8 sps:$4 sm:$0xff]  }
 0x3b7   :  { %3355 = vmatprep.subr.bf16.mxu0 %v4522_v61  ;;  %v4595_v61 = vld [vmem:[#allocation5 + $0x380] ss:$8 sps:$4 sm:$0xff]  }
 0x3ba   :  { %3356 = vmatpush1.bf16.msra.mxu0 %v4520_v62  ;;  %v4600_v62 = vld [vmem:[#allocation5 + $0x394] ss:$8 sps:$4 sm:$0xff]  }
 0x3bb   :  { %3366 = vmatprep.subr.bf16.mxu0 %v4525_v63  ;;  %v4598_v63 = vld [vmem:[#allocation5 + $0x390] ss:$8 sps:$4 sm:$0xff]  }
 0x3bd   :  { %3358 = vmatmul.mubr.bf16.vlgmr.msra.gmra.mrb[0].mxu0 %v2110_v2  ;;  %v4606_v2 = vld [vmem:[#allocation5 + $0x3b4] ss:$8 sps:$4 sm:$0xff]  }
 0x3be   :  { %3367 = vmatpush1.bf16.msra.mxu0 %v4523_v1  ;;  %3398 = vmatprep.mubr.bf16.mxu0 %v2113_v8  ;;  %v4601_v1 = vld [vmem:[#allocation5 + $0x3a0] ss:$8 sps:$4 sm:$0xff]   ;;  %v4609_v8 = vld [vmem:[#allocation5 + $0x3c4] ss:$8 sps:$4 sm:$0xff]  }
 0x3bf   :  { %3368 = vmatprep.subr.bf16.mxu0 %v4528_v7  ;;  %v4604_v7 = vld [vmem:[#allocation5 + $0x3b0] ss:$8 sps:$4 sm:$0xff]  }
 0x3c2   :  { %3369 = vmatpush1.bf16.msra.mxu0 %v4526_v6  ;;  %v4607_v6 = vld [vmem:[#allocation5 + $0x3c0] ss:$8 sps:$4 sm:$0xff]  }
 0x3c3   :  { %3370 = vmatprep.subr.bf16.mxu0 %v4531_v14  ;;  %v4612_v14 = vld [vmem:[#allocation5 + $0x3d4] ss:$8 sps:$4 sm:$0xff]  }
 0x3c6   :  { %3371 = vmatpush1.bf16.msra.mxu0 %v4529_v10  ;;  %v4610_v10 = vld [vmem:[#allocation5 + $0x3d0] ss:$8 sps:$4 sm:$0xff]  }
 0x3c7   :  { %3372 = vmatprep.subr.bf16.mxu0 %v4534_v11  ;;  %v4615_v11 = vld [vmem:[#allocation5 + $0x3e4] ss:$8 sps:$4 sm:$0xff]  }
 0x3ca   :  { %3373 = vmatpush1.bf16.msra.mxu0 %v4532_v46  ;;  %v4613_v46 = vld [vmem:[#allocation5 + $0x3e0] ss:$8 sps:$4 sm:$0xff]  }
 0x3cb   :  { %3374 = vmatprep.subr.bf16.mxu0 %v4537_v13  ;;  %v4618_v13 = vld [vmem:[#allocation5 + $0x3f4] ss:$8 sps:$4 sm:$0xff]  }
 0x3ce   :  { %3375 = vmatpush1.bf16.msra.mxu0 %v4535_v17  ;;  %v4616_v17 = vld [vmem:[#allocation5 + $0x3f0] ss:$8 sps:$4 sm:$0xff]  }
 0x3cf   :  { %3376 = vmatprep.subr.bf16.mxu0 %v4540_v19  ;;  %v4621_v19 = vld [vmem:[#allocation5 + $0x404] ss:$8 sps:$4 sm:$0xff]  }
 0x3d2   :  { %3377 = vmatpush1.bf16.msra.mxu0 %v4538_v16  ;;  %v4619_v16 = vld [vmem:[#allocation5 + $0x400] ss:$8 sps:$4 sm:$0xff]  }
 0x3d3   :  { %3378 = vmatprep.subr.bf16.mxu0 %v4543_v20  ;;  %v2114_v20 = vpack.c.bf16 %v5133_v36, %v5133_v36  ;;  %v4631_v36 = vld [vmem:[#allocation5 + $0x440] ss:$8 sps:$4 sm:$0xff]  }
 0x3d6   :  { %3379 = vmatpush1.bf16.msra.mxu0 %v4541_v21  ;;  %v4624_v21 = vld [vmem:[#allocation5 + $0x414] ss:$8 sps:$4 sm:$0xff]  }
 0x3d7   :  { %3380 = vmatprep.subr.bf16.mxu0 %v4546_v5  ;;  %v2117_v5 = vpack.c.bf16 %v5127_v28, %v5127_v28  ;;  %v4634_v28 = vld [vmem:[#allocation5 + $0x450] ss:$8 sps:$4 sm:$0xff]  }
 0x3da   :  { %3381 = vmatpush1.bf16.msra.mxu0 %v4544_v59  ;;  %v4622_v59 = vld [vmem:[#allocation5 + $0x410] ss:$8 sps:$4 sm:$0xff]  }
 0x3db   :  { %3382 = vmatprep.subr.bf16.mxu0 %v4549_v31  ;;  %v4627_v31 = vld [vmem:[#allocation5 + $0x424] ss:$8 sps:$4 sm:$0xff]  }
 0x3de   :  { %3383 = vmatpush1.bf16.msra.mxu0 %v4547_v33  ;;  %v4625_v33 = vld [vmem:[#allocation5 + $0x420] ss:$8 sps:$4 sm:$0xff]  }
 0x3df   :  { %3384 = vmatprep.subr.bf16.mxu0 %v4552_v22  ;;  %v4630_v22 = vld [vmem:[#allocation5 + $0x434] ss:$8 sps:$4 sm:$0xff]  }
 0x3e2   :  { %3385 = vmatpush1.bf16.msra.mxu0 %v4550_v23  ;;  %v4628_v23 = vld [vmem:[#allocation5 + $0x430] ss:$8 sps:$4 sm:$0xff]  }
 0x3e3   :  { %3386 = vmatprep.subr.bf16.mxu0 %v4555_v32  ;;  %v4633_v32 = vld [vmem:[#allocation5 + $0x444] ss:$8 sps:$4 sm:$0xff]  }
 0x3e6   :  { %3387 = vmatpush1.bf16.msra.mxu0 %v4553_v34  ;;  %v4636_v34 = vld [vmem:[#allocation5 + $0x454] ss:$8 sps:$4 sm:$0xff]  }
 0x3e7   :  { %3388 = vmatprep.subr.bf16.mxu0 %v4558_v35  ;;  %v4639_v35 = vld [vmem:[#allocation5 + $0x464] ss:$8 sps:$4 sm:$0xff]  }
 0x3ea   :  { %3389 = vmatpush1.bf16.msra.mxu0 %v4556_v55  ;;  %v4637_v55 = vld [vmem:[#allocation5 + $0x460] ss:$8 sps:$4 sm:$0xff]  }
 0x3eb   :  { %3390 = vmatprep.subr.bf16.mxu0 %v4561_v37  ;;  %v4642_v37 = vld [vmem:[#allocation5 + $0x474] ss:$8 sps:$4 sm:$0xff]  }
 0x3ee   :  { %3391 = vmatpush1.bf16.msra.mxu0 %v4559_v53  ;;  %v4640_v53 = vld [vmem:[#allocation5 + $0x470] ss:$8 sps:$4 sm:$0xff]  }
 0x3ef   :  { %3392 = vmatprep.subr.bf16.mxu0 %v4564_v38  ;;  %v4645_v38 = vld [vmem:[#allocation5 + $0x484] ss:$8 sps:$4 sm:$0xff]  }
 0x3f2   :  { %3393 = vmatpush1.bf16.msra.mxu0 %v4562_v9  ;;  %v4643_v9 = vld [vmem:[#allocation5 + $0x480] ss:$8 sps:$4 sm:$0xff]  }
 0x3f3   :  { %3394 = vmatprep.subr.bf16.mxu0 %v4567_v42  ;;  %v4648_v42 = vld [vmem:[#allocation5 + $0x494] ss:$8 sps:$4 sm:$0xff]  }
 0x3f6   :  { %3395 = vmatpush1.bf16.msra.mxu0 %v4565_v44  ;;  %v4646_v44 = vld [vmem:[#allocation5 + $0x490] ss:$8 sps:$4 sm:$0xff]  }
 0x3f7   :  { %3396 = vmatprep.subr.bf16.mxu0 %v4570_v4  ;;  %v4651_v4 = vld [vmem:[#allocation5 + $0x4a4] ss:$8 sps:$4 sm:$0xff]  }
 0x3fa   :  { %3397 = vmatpush1.bf16.msra.mxu0 %v4568_v47  ;;  %v4649_v47 = vld [vmem:[#allocation5 + $0x4a0] ss:$8 sps:$4 sm:$0xff]  }
 0x3fb   :  { %3407 = vmatprep.subr.bf16.mxu0 %v4573_v45  ;;  %v4654_v45 = vld [vmem:[#allocation5 + $0x4b4] ss:$8 sps:$4 sm:$0xff]  }
 0x3fd   :  { %3399 = vmatmul.mubr.bf16.vlgmr.msra.gmra.mrb[0].mxu0 %v2112_v30  ;;  %v4657_v30 = vld [vmem:[#allocation5 + $0x4c4] ss:$8 sps:$4 sm:$0xff]  }
 0x3fe   :  { %3408 = vmatpush1.bf16.msra.mxu0 %v4571_v48  ;;  %3439 = vmatprep.mubr.bf16.mxu0 %v2115_v49  ;;  %v4652_v48 = vld [vmem:[#allocation5 + $0x4b0] ss:$8 sps:$4 sm:$0xff]   ;;  %v4660_v49 = vld [vmem:[#allocation5 + $0x4d4] ss:$8 sps:$4 sm:$0xff]  }
 0x3ff   :  { %3409 = vmatprep.subr.bf16.mxu0 %v4576_v39  ;;  %v4655_v39 = vld [vmem:[#allocation5 + $0x4c0] ss:$8 sps:$4 sm:$0xff]  }
 0x402   :  { %3410 = vmatpush1.bf16.msra.mxu0 %v4574_v15  ;;  %v4658_v15 = vld [vmem:[#allocation5 + $0x4d0] ss:$8 sps:$4 sm:$0xff]  }
 0x403   :  { %3411 = vmatprep.subr.bf16.mxu0 %v4579_v51  ;;  %v4663_v51 = vld [vmem:[#allocation5 + $0x4e4] ss:$8 sps:$4 sm:$0xff]  }
 0x406   :  { %3412 = vmatpush1.bf16.msra.mxu0 %v4577_v12  ;;  %v4661_v12 = vld [vmem:[#allocation5 + $0x4e0] ss:$8 sps:$4 sm:$0xff]  }
 0x407   :  { %3413 = vmatprep.subr.bf16.mxu0 %v4582_v52  ;;  %v4666_v52 = vld [vmem:[#allocation5 + $0x4f4] ss:$8 sps:$4 sm:$0xff]  }
 0x40a   :  { %3414 = vmatpush1.bf16.msra.mxu0 %v4580_v54  ;;  %v4664_v54 = vld [vmem:[#allocation5 + $0x4f0] ss:$8 sps:$4 sm:$0xff]  }
 0x40b   :  { %3415 = vmatprep.subr.bf16.mxu0 %v4585_v26  ;;  %v4669_v26 = vld [vmem:[#allocation5 + $0x504] ss:$8 sps:$4 sm:$0xff]  }
 0x40e   :  { %3416 = vmatpush1.bf16.msra.mxu0 %v4583_v3  ;;  %v4667_v3 = vld [vmem:[#allocation5 + $0x500] ss:$8 sps:$4 sm:$0xff]  }
 0x40f   :  { %3417 = vmatprep.subr.bf16.mxu0 %v4588_v56  ;;  %v2116_v56 = vpack.c.bf16 %v5130_v29, %v5130_v29  ;;  %v4679_v29 = vld [vmem:[#allocation5 + $0x540] ss:$8 sps:$4 sm:$0xff]  }
 0x412   :  { %3418 = vmatpush1.bf16.msra.mxu0 %v4586_v24  ;;  %v4672_v24 = vld [vmem:[#allocation5 + $0x514] ss:$8 sps:$4 sm:$0xff]  }
 0x413   :  { %3419 = vmatprep.subr.bf16.mxu0 %v4591_v27  ;;  %v2119_v27 = vpack.c.bf16 %v5136_v50, %v5136_v50  ;;  %v4682_v50 = vld [vmem:[#allocation5 + $0x550] ss:$8 sps:$4 sm:$0xff]  }
 0x416   :  { %3420 = vmatpush1.bf16.msra.mxu0 %v4589_v57  ;;  %v4670_v57 = vld [vmem:[#allocation5 + $0x510] ss:$8 sps:$4 sm:$0xff]  }
 0x417   :  { %3421 = vmatprep.subr.bf16.mxu0 %v4594_v25  ;;  %v4675_v25 = vld [vmem:[#allocation5 + $0x524] ss:$8 sps:$4 sm:$0xff]  }
 0x41a   :  { %3422 = vmatpush1.bf16.msra.mxu0 %v4592_v58  ;;  %v4673_v58 = vld [vmem:[#allocation5 + $0x520] ss:$8 sps:$4 sm:$0xff]  }
 0x41b   :  { %3423 = vmatprep.subr.bf16.mxu0 %v4597_v60  ;;  %v4678_v60 = vld [vmem:[#allocation5 + $0x534] ss:$8 sps:$4 sm:$0xff]  }
 0x41e   :  { %3424 = vmatpush1.bf16.msra.mxu0 %v4595_v61  ;;  %v4676_v61 = vld [vmem:[#allocation5 + $0x530] ss:$8 sps:$4 sm:$0xff]  }
 0x41f   :  { %3425 = vmatprep.subr.bf16.mxu0 %v4600_v62  ;;  %v4681_v62 = vld [vmem:[#allocation5 + $0x544] ss:$8 sps:$4 sm:$0xff]  }
 0x422   :  { %3426 = vmatpush1.bf16.msra.mxu0 %v4598_v63  ;;  %v4684_v63 = vld [vmem:[#allocation5 + $0x554] ss:$8 sps:$4 sm:$0xff]  }
 0x423   :  { %3427 = vmatprep.subr.bf16.mxu0 %v4603_v0  ;;  %v4687_v0 = vld [vmem:[#allocation5 + $0x564] ss:$8 sps:$4 sm:$0xff]  }
 0x426   :  { %3428 = vmatpush1.bf16.msra.mxu0 %v4601_v1  ;;  %v4685_v1 = vld [vmem:[#allocation5 + $0x560] ss:$8 sps:$4 sm:$0xff]  }
 0x427   :  { %3429 = vmatprep.subr.bf16.mxu0 %v4606_v2  ;;  %v4690_v2 = vld [vmem:[#allocation5 + $0x574] ss:$8 sps:$4 sm:$0xff]  }
 0x42a   :  { %3430 = vmatpush1.bf16.msra.mxu0 %v4604_v7  ;;  %v4688_v7 = vld [vmem:[#allocation5 + $0x570] ss:$8 sps:$4 sm:$0xff]  }
 0x42b   :  { %3431 = vmatprep.subr.bf16.mxu0 %v4609_v8  ;;  %v4693_v8 = vld [vmem:[#allocation5 + $0x584] ss:$8 sps:$4 sm:$0xff]  }
 0x42e   :  { %3432 = vmatpush1.bf16.msra.mxu0 %v4607_v6  ;;  %v4691_v6 = vld [vmem:[#allocation5 + $0x580] ss:$8 sps:$4 sm:$0xff]  }
 0x42f   :  { %3433 = vmatprep.subr.bf16.mxu0 %v4612_v14  ;;  %v4696_v14 = vld [vmem:[#allocation5 + $0x594] ss:$8 sps:$4 sm:$0xff]  }
 0x432   :  { %3434 = vmatpush1.bf16.msra.mxu0 %v4610_v10  ;;  %v4694_v10 = vld [vmem:[#allocation5 + $0x590] ss:$8 sps:$4 sm:$0xff]  }
 0x433   :  { %3435 = vmatprep.subr.bf16.mxu0 %v4615_v11  ;;  %v4699_v11 = vld [vmem:[#allocation5 + $0x5a4] ss:$8 sps:$4 sm:$0xff]  }
 0x436   :  { %3436 = vmatpush1.bf16.msra.mxu0 %v4613_v46  ;;  %v4697_v46 = vld [vmem:[#allocation5 + $0x5a0] ss:$8 sps:$4 sm:$0xff]  }
 0x437   :  { %3437 = vmatprep.subr.bf16.mxu0 %v4618_v13  ;;  %v4702_v13 = vld [vmem:[#allocation5 + $0x5b4] ss:$8 sps:$4 sm:$0xff]  }
 0x43a   :  { %3438 = vmatpush1.bf16.msra.mxu0 %v4616_v17  ;;  %v4700_v17 = vld [vmem:[#allocation5 + $0x5b0] ss:$8 sps:$4 sm:$0xff]  }
 0x43b   :  { %3448 = vmatprep.subr.bf16.mxu0 %v4621_v19  ;;  %v4705_v19 = vld [vmem:[#allocation5 + $0x5c4] ss:$8 sps:$4 sm:$0xff]  }
 0x43d   :  { %3440 = vmatmul.mubr.bf16.vlgmr.msra.gmra.mrb[0].mxu0 %v2114_v20  ;;  %v4708_v20 = vld [vmem:[#allocation5 + $0x5d4] ss:$8 sps:$4 sm:$0xff]  }
 0x43e   :  { %3449 = vmatpush1.bf16.msra.mxu0 %v4619_v16  ;;  %3480 = vmatprep.mubr.bf16.mxu0 %v2117_v5  ;;  %v4703_v16 = vld [vmem:[#allocation5 + $0x5c0] ss:$8 sps:$4 sm:$0xff]   ;;  %v4711_v5 = vld [vmem:[#allocation5 + $0x5e4] ss:$8 sps:$4 sm:$0xff]  }
 0x43f   :  { %3450 = vmatprep.subr.bf16.mxu0 %v4624_v21  ;;  %v4706_v21 = vld [vmem:[#allocation5 + $0x5d0] ss:$8 sps:$4 sm:$0xff]  }
 0x442   :  { %3451 = vmatpush1.bf16.msra.mxu0 %v4622_v59  ;;  %v4709_v59 = vld [vmem:[#allocation5 + $0x5e0] ss:$8 sps:$4 sm:$0xff]  }
 0x443   :  { %3452 = vmatprep.subr.bf16.mxu0 %v4627_v31  ;;  %v4714_v31 = vld [vmem:[#allocation5 + $0x5f4] ss:$8 sps:$4 sm:$0xff]  }
 0x446   :  { %3453 = vmatpush1.bf16.msra.mxu0 %v4625_v33  ;;  %v4712_v33 = vld [vmem:[#allocation5 + $0x5f0] ss:$8 sps:$4 sm:$0xff]  }
 0x447   :  { %3454 = vmatprep.subr.bf16.mxu0 %v4630_v22  ;;  %v2118_v22 = vpack.c.bf16 %v5142_v41, %v5142_v41 }
 0x44a   :  { %3455 = vmatpush1.bf16.msra.mxu0 %v4628_v23  ;;  %v2312_v23 = vld [vmem:[%s5212_s10] sm:$0x3] }
 0x44b   :  { %3456 = vmatprep.subr.bf16.mxu0 %v4633_v32  ;;  %v2317_v32 = vrot.slane %v2312_v23, %v4910_v43 }
 0x44e   :  { %3457 = vmatpush1.bf16.msra.mxu0 %v4631_v36  ;;  %v2321_v36 = vrot.slane %v2312_v23, %v4903_v40 }
 0x44f   :  { %3458 = vmatprep.subr.bf16.mxu0 %v4636_v34 }
 0x452   :  { %3459 = vmatpush1.bf16.msra.mxu0 %v4634_v28 }
 0x453   :  { %3460 = vmatprep.subr.bf16.mxu0 %v4639_v35 }
 0x456   :  { %3461 = vmatpush1.bf16.msra.mxu0 %v4637_v55 }
 0x457   :  { %3462 = vmatprep.subr.bf16.mxu0 %v4642_v37 }
 0x45a   :  { %3463 = vmatpush1.bf16.msra.mxu0 %v4640_v53 }
 0x45b   :  { %3464 = vmatprep.subr.bf16.mxu0 %v4645_v38 }
 0x45e   :  { %3465 = vmatpush1.bf16.msra.mxu0 %v4643_v9 }
 0x45f   :  { %3466 = vmatprep.subr.bf16.mxu0 %v4648_v42 }
 0x462   :  { %3467 = vmatpush1.bf16.msra.mxu0 %v4646_v44 }
 0x463   :  { %3468 = vmatprep.subr.bf16.mxu0 %v4651_v4 }
 0x466   :  { %3469 = vmatpush1.bf16.msra.mxu0 %v4649_v47 }
 0x467   :  { %3470 = vmatprep.subr.bf16.mxu0 %v4654_v45 }
 0x46a   :  { %3471 = vmatpush1.bf16.msra.mxu0 %v4652_v48 }
 0x46b   :  { %3472 = vmatprep.subr.bf16.mxu0 %v4657_v30 }
 0x46e   :  { %3473 = vmatpush1.bf16.msra.mxu0 %v4655_v39 }
 0x46f   :  { %3474 = vmatprep.subr.bf16.mxu0 %v4660_v49 }
 0x472   :  { %3475 = vmatpush1.bf16.msra.mxu0 %v4658_v15 }
 0x473   :  { %3476 = vmatprep.subr.bf16.mxu0 %v4663_v51 }
 0x476   :  { %3477 = vmatpush1.bf16.msra.mxu0 %v4661_v12 }
 0x477   :  { %3478 = vmatprep.subr.bf16.mxu0 %v4666_v52 }
 0x47a   :  { %3479 = vmatpush1.bf16.msra.mxu0 %v4664_v54 }
 0x47b   :  { %3489 = vmatprep.subr.bf16.mxu0 %v4669_v26 }
 0x47d   :  { %3481 = vmatmul.mubr.bf16.vlgmr.msra.gmra.mrb[0].mxu0 %v2116_v56 }
 0x47e   :  { %3490 = vmatpush1.bf16.msra.mxu0 %v4667_v3  ;;  %3521 = vmatprep.mubr.bf16.mxu0 %v2119_v27 }
 0x47f   :  { %3491 = vmatprep.subr.bf16.mxu0 %v4672_v24 }
 0x482   :  { %3492 = vmatpush1.bf16.msra.mxu0 %v4670_v57 }
 0x483   :  { %3493 = vmatprep.subr.bf16.mxu0 %v4675_v25 }
 0x486   :  { %3494 = vmatpush1.bf16.msra.mxu0 %v4673_v58 }
 0x487   :  { %3495 = vmatprep.subr.bf16.mxu0 %v4678_v60 }
 0x48a   :  { %3496 = vmatpush1.bf16.msra.mxu0 %v4676_v61 }
 0x48b   :  { %3497 = vmatprep.subr.bf16.mxu0 %v4681_v62 }
 0x48e   :  { %3498 = vmatpush1.bf16.msra.mxu0 %v4679_v29 }
 0x48f   :  { %3499 = vmatprep.subr.bf16.mxu0 %v4684_v63 }
 0x492   :  { %3500 = vmatpush1.bf16.msra.mxu0 %v4682_v50 }
 0x493   :  { %3501 = vmatprep.subr.bf16.mxu0 %v4687_v0 }
 0x496   :  { %3502 = vmatpush1.bf16.msra.mxu0 %v4685_v1 }
 0x497   :  { %3503 = vmatprep.subr.bf16.mxu0 %v4690_v2 }
 0x49a   :  { %3504 = vmatpush1.bf16.msra.mxu0 %v4688_v7 }
 0x49b   :  { %3505 = vmatprep.subr.bf16.mxu0 %v4693_v8 }
 0x49e   :  { %3506 = vmatpush1.bf16.msra.mxu0 %v4691_v6 }
 0x49f   :  { %3507 = vmatprep.subr.bf16.mxu0 %v4696_v14 }
 0x4a2   :  { %3508 = vmatpush1.bf16.msra.mxu0 %v4694_v10 }
 0x4a3   :  { %3509 = vmatprep.subr.bf16.mxu0 %v4699_v11 }
 0x4a6   :  { %3510 = vmatpush1.bf16.msra.mxu0 %v4697_v46 }
 0x4a7   :  { %3511 = vmatprep.subr.bf16.mxu0 %v4702_v13 }
 0x4aa   :  { %3512 = vmatpush1.bf16.msra.mxu0 %v4700_v17  ;;  %v3530_v17 = vld [vmem:[%s5213_s11] sm:$0x3] }
 0x4ab   :  { %3513 = vmatprep.subr.bf16.mxu0 %v4705_v19 }
 0x4ae   :  { %3514 = vmatpush1.bf16.msra.mxu0 %v4703_v16 }
 0x4af   :  { %3515 = vmatprep.subr.bf16.mxu0 %v4708_v20 }
 0x4b2   :  { %3516 = vmatpush1.bf16.msra.mxu0 %v4706_v21 }
 0x4b3   :  { %3517 = vmatprep.subr.bf16.mxu0 %v4711_v5 }
 0x4b6   :  { %3518 = vmatpush1.bf16.msra.mxu0 %v4709_v59 }
 0x4b7   :  { %3519 = vmatprep.subr.bf16.mxu0 %v4714_v31 }
 0x4ba   :  { %3520 = vmatpush1.bf16.msra.mxu0 %v4712_v33 }
 0x4bd   :  { %3522 = vmatmul.mubr.bf16.vlgmr.msra.gmra.mrb[0].mxu0 %v2118_v22 }
 0x590   :  { %v3523_v34 = vpop.f32.mrb[0].mxu0 }
 0x591   :  { %v4085_v28 = vadd.f32 %v3523_v34, %v2317_v32  ;;  %v3525_v35 = vpop.f32.mrb[1].mxu0  ;;  %v3531_v32 = vld [vmem:[%s5214_s12] sm:$0x3] }
 0x592   :  { %v4086_v55 = vadd.f32 %v3525_v35, %v2321_v36  ;;  %v3527_v37 = vpop.f32.mrb[2].mxu0  ;;  %v3641_v36 = vld [vmem:[%s5215_s13] sm:$0x77] }
 0x593   :  { %v3532_v53 = vsel %vm201_vm0, %v4085_v28, 0.0  ;;  %v3528_v38 = vpop.f32.mrb[3].mxu0  ;;  %v3644_v37 = vcombine.high %v3641_v36, %v3641_v36 }
 0x594   :  { %v3533_v9 = vrot.slane %v3532_v53, 4  ;;  %v3539_v41 = vsel %vm201_vm0, %v4086_v55, 0.0 }
 0x595   :  { %v3540_v42 = vrot.slane %v3539_v41, 4 }
 0x596   :  { %v3534_v44 = vadd.f32 %v3533_v9, %v3532_v53  ;;  %v3663_v9 = vrot.slane %v3641_v36, 5 }
 0x597   :  { %v3541_v4 = vadd.f32 %v3540_v42, %v3539_v41  ;;  %v3664_v41 = vrot.slane %v3644_v37, 5 }
 0x598   :  { %v3535_v47 = vrot.slane %v3534_v44, 2 }
 0x599   :  { %v3542_v45 = vrot.slane %v3541_v4, 2 }
 0x59a   :  { %v3536_v48 = vadd.f32 %v3535_v47, %v3534_v44 }
 0x59b   :  { %v3543_v30 = vadd.f32 %v3542_v45, %v3541_v4 }
 0x59c   :  { %v3537_v39 = vrot.slane %v3536_v48, 1 }
 0x59d   :  { %v3544_v49 = vrot.slane %v3543_v30, 1 }
 0x59e   :  { %v3538_v15 = vadd.f32 %v3537_v39, %v3536_v48 }
 0x59f   :  { %v3545_v51 = vadd.f32 %v3544_v49, %v3543_v30 }
 0x5a0   :  { %v3547_v12 = vmul.f32 0.16666667, %v3538_v15 }
 0x5a1   :  { %v3548_v52 = vmul.f32 0.16666667, %v3545_v51 }
 0x5a2   :  { %v3549_v54 = vsub.f32 %v4085_v28, %v3547_v12 }
 0x5a3   :  { %v3550_v26 = vsub.f32 %v4086_v55, %v3548_v52 }
 0x5a4   :  { %v3551_v3 = vmul.f32 %v3549_v54, %v3549_v54 }
 0x5a5   :  { %v3552_v56 = vmul.f32 %v3550_v26, %v3550_v26 }
 0x5a6   :  { %v3553_v24 = vsel %vm201_vm0, %v3551_v3, 0.0 }
 0x5a7   :  { %v3554_v27 = vrot.slane %v3553_v24, 4  ;;  %v3560_v57 = vsel %vm201_vm0, %v3552_v56, 0.0 }
 0x5a8   :  { %v3561_v25 = vrot.slane %v3560_v57, 4 }
 0x5a9   :  { %v3555_v58 = vadd.f32 %v3554_v27, %v3553_v24 }
 0x5aa   :  { %v3562_v60 = vadd.f32 %v3561_v25, %v3560_v57 }
 0x5ab   :  { %v3556_v61 = vrot.slane %v3555_v58, 2 }
 0x5ac   :  { %v3563_v62 = vrot.slane %v3562_v60, 2 }
 0x5ad   :  { %v3557_v29 = vadd.f32 %v3556_v61, %v3555_v58  ;;  %v3660_v61 = vstv %s5216_s14 }
 0x5ae   :  { %v3564_v63 = vadd.f32 %v3563_v62, %v3562_v60 }
 0x5af   :  { %v3558_v50 = vrot.slane %v3557_v29, 1 }
 0x5b0   :  { %v3565_v0 = vrot.slane %v3564_v63, 1 }
 0x5b1   :  { %v3559_v1 = vadd.f32 %v3558_v50, %v3557_v29 }
 0x5b2   :  { %v3566_v2 = vadd.f32 %v3565_v0, %v3564_v63 }
 0x5b3   :  { %v3567_v7 = vmul.f32 0.16666667, %v3559_v1 }
 0x5b4   :  { %v3568_v8 = vmul.f32 0.16666667, %v3566_v2 }
 0x5b5   :  { %v3569_v6 = vadd.f32 1e-05, %v3567_v7 }
 0x5b6   :  { %v3570_v14 = vadd.f32 1e-05, %v3568_v8 }
 0x5b7   :  { %4728 = vrsqrt.f32 %v3569_v6 }
 0x5b8   :  { %4730 = vrsqrt.f32 %v3570_v14 }
 0x5c1   :  { %v4729_v10 = vpop.eup %4728 }
 0x5c2   :  { %v4731_v11 = vpop.eup %4730 }
 0x5c3   :  { %v3575_v46 = vcombine.low %v4729_v10, %v4731_v11 }
 0x5c5   :  { %v3582_v13 = vrot.slane %v3575_v46, %v4952_v18 }
 0x5c7   :  { %v3589_v19 = vrot.slane %v3582_v13, %v4952_v18 }
 0x5c9   :  { %v3591_v16 = vmul.f32 %v3589_v19, %v3530_v17 }
 0x5cb   :  { %v3596_v20 = vrot.slane %v3591_v16, %v4910_v43  ;;  %v3600_v21 = vrot.slane %v3591_v16, %v4903_v40 }
 0x5cd   :  { %v3603_v5 = vmul.f32 %v3596_v20, %v3547_v12  ;;  %v3604_v59 = vmul.f32 %v3600_v21, %v3548_v52  ;;  %v3625_v31 = vmul.f32 %v4086_v55, %v3600_v21  ;;  %v3624_v33 = vmul.f32 %v4085_v28, %v3596_v20 }
 0x5cf   :  { %v3607_v22 = vcombine.low %v3603_v5, %v3604_v59 }
 0x5d1   :  { %v3614_v23 = vrot.slane %v3607_v22, %v4952_v18 }
 0x5d3   :  { %v3621_v34 = vrot.slane %v3614_v23, %v4952_v18 }
 0x5d5   :  { %v3623_v35 = vsub.f32 %v3531_v32, %v3621_v34 }
 0x5d7   :  { %v3630_v53 = vrot.slane %v3623_v35, %v4910_v43  ;;  %v3634_v55 = vrot.slane %v3623_v35, %v4903_v40 }
 0x5d9   :  { %v3637_v28 = vadd.f32 %v3630_v53, %v3624_v33  ;;  %v3638_v38 = vadd.f32 %v3634_v55, %v3625_v31 }
 0x5db   :  { %v3639_v42 = vmax.f32 %v3637_v28, 0.0  ;;  %v3640_v44 = vmax.f32 %v3638_v38, 0.0 }
 0x5dd   :  { %v3667_v4 = vmul.f32 %v3663_v9, %v3639_v42  ;;  %v3668_v47 = vmul.f32 %v3664_v41, %v3640_v44  ;;  %v3646_v45 = vmul.f32 %v3641_v36, %v3639_v42  ;;  %v3647_v48 = vmul.f32 %v3644_v37, %v3640_v44 }
 0x5df   :  { %v3670_v30 = vsel %vm3669_vm5, %v3667_v4, 0.0  ;;  %v3671_v39 = vsel %vm3669_vm5, %v3668_v47, 0.0  ;;  %v3648_v18 = vsel %vm2095_vm3, %v3646_v45, 0.0  ;;  %v3649_v49 = vsel %vm2095_vm3, %v3647_v48, 0.0 }
 0x5e0   :  { %v3672_v43 = vadd.f32 %v3671_v39, %v3670_v30  ;;  %v3650_v15 = vadd.f32 %v3649_v49, %v3648_v18 }
 0x5e2   :  { %3673 = vadd.xlane.f32.xlu1 %v3672_v43  ;;  %3651 = vadd.xlane.f32.xlu0 %v3650_v15 }
 0x66f   :  { %v3674_v40 = vpop.xlane.xlu1 %3673  ;;  %v3652_v51 = vpop.xlane.xlu0 %3651 }
 0x670   :  { %v3676_v12 = vrot.slane %v3674_v40, 3  ;;  %v3653_v52 = vsel %vm2095_vm3, %v3652_v51, 0.0 }
 0x671   :  { %v3654_v54 = vrot.slane %v3653_v52, 4 }
 0x672   :  { %v3678_v26 = vsel %vm2095_vm3, %v3676_v12, 0.0 }
 0x673   :  { %v3679_v3 = vrot.slane %v3678_v26, 4  ;;  %v3655_v56 = vadd.f32 %v3654_v54, %v3653_v52 }
 0x675   :  { %v3680_v24 = vadd.f32 %v3679_v3, %v3678_v26  ;;  %v3656_v27 = vrot.slane %v3655_v56, 2 }
 0x677   :  { %v3681_v57 = vrot.slane %v3680_v24, 2  ;;  %v3657_v25 = vadd.f32 %v3656_v27, %v3655_v56 }
 0x679   :  { %v3682_v58 = vadd.f32 %v3681_v57, %v3680_v24  ;;  %v3658_v60 = vrot.slane %v3657_v25, 1 }
 0x67b   :  { %v3683_v62 = vrot.slane %v3682_v58, 1  ;;  %v3659_v29 = vadd.f32 %v3658_v60, %v3657_v25 }
 0x67d   :  { %v3684_v63 = vadd.f32 %v3683_v62, %v3682_v58  ;;  %v3661_v50 = vadd.f32 %v3660_v61, %v3659_v29 }
 0x67f   :  { %v3685_v0 = vadd.f32 %v3684_v63, %v3660_v61  ;;  %3662 = vst [vmem:[%s5217_s15] sm:$0x1] %v3661_v50 }
 0x681   :  { %3686 = vst [vmem:[%s5217_s15 + $0x1] sm:$0x1] %v3685_v0 }
 0x682   :  { %3691 = vsyncpa [#allocation4], 1 }
 0x683   :  { %3692 = vsyncpa [#allocation6], 1 }

</bundles_post_ra>
